<compile_context>
chip_gen: v7x
topology: tpu7x:2x2x1
jax: 0.10.0
libtpu: 0.0.40
codegen_flags: <defaults>
</compile_context>

<pallas_src>
import math
import numpy as np
import jax
import jax.numpy as jnp
from jax.experimental import pallas as pl
from jax.experimental.pallas import tpu as pltpu

# --- model hyperparameters (small, consistent with the module) ---
VOCAB = 64
VOCAB_PAD = 128          # lane-dense padded LM-head width
N_EMBEDS = 32
N_LAYERS = 2
BLOCK_SIZE = 8           # max sequence length
N_HEADS = 4
HEAD_DIM = N_EMBEDS // N_HEADS
LN_EPS = 1e-5            # PyTorch nn.LayerNorm default
NEG_BIAS = -1e30         # additive mask (finite; safer than -inf)


def init_params(key):
    keys = jax.random.split(key, 12)

    def nrm(k, shape, scale=0.02):
        return (scale * jax.random.normal(k, shape)).astype(jnp.float32)

    p = {}
    p['tok_emb'] = nrm(keys[0], (VOCAB, N_EMBEDS))
    p['pos_emb'] = nrm(keys[1], (BLOCK_SIZE, N_EMBEDS))
    p['ln1_g'] = jnp.ones((N_LAYERS, N_EMBEDS), jnp.float32)
    p['ln1_b'] = jnp.zeros((N_LAYERS, N_EMBEDS), jnp.float32)
    p['wqkv'] = nrm(keys[2], (N_LAYERS, N_EMBEDS, 3 * N_EMBEDS))
    p['bqkv'] = nrm(keys[3], (N_LAYERS, 3 * N_EMBEDS))
    p['wproj'] = nrm(keys[4], (N_LAYERS, N_EMBEDS, N_EMBEDS))
    p['bproj'] = nrm(keys[5], (N_LAYERS, N_EMBEDS))
    p['ln2_g'] = jnp.ones((N_LAYERS, N_EMBEDS), jnp.float32)
    p['ln2_b'] = jnp.zeros((N_LAYERS, N_EMBEDS), jnp.float32)
    p['w1'] = nrm(keys[6], (N_LAYERS, N_EMBEDS, 4 * N_EMBEDS))
    p['b1'] = nrm(keys[7], (N_LAYERS, 4 * N_EMBEDS))
    p['w2'] = nrm(keys[8], (N_LAYERS, 4 * N_EMBEDS, N_EMBEDS))
    p['b2'] = nrm(keys[9], (N_LAYERS, N_EMBEDS))
    p['lnf_g'] = jnp.ones((1, N_EMBEDS), jnp.float32)
    p['lnf_b'] = jnp.zeros((1, N_EMBEDS), jnp.float32)
    p['whead'] = nrm(keys[10], (N_EMBEDS, VOCAB))
    p['bhead'] = nrm(keys[11], (1, VOCAB))
    return p


def _attention_constants(B, T):
    """Static selector / bias matrices, built once with numpy (no kernel work)."""
    C = N_EMBEDS
    N = B * T
    HN = N_HEADS * N
    scale = 1.0 / math.sqrt(HEAD_DIM)

    # head_sel[c, h*N + m] = scale iff channel c belongs to head h (score scale folded in)
    c_i = np.arange(C)[:, None]
    j_i = np.arange(HN)[None, :]
    head_sel = ((c_i // HEAD_DIM) == (j_i // N)).astype(np.float32) * scale   # (C, HN)

    # v_sel[h*N + m, c] = 1 iff channel c belongs to head h
    r_i = np.arange(HN)[:, None]
    d_i = np.arange(C)[None, :]
    v_sel = ((r_i // N) == (d_i // HEAD_DIM)).astype(np.float32)              # (HN, C)

    # additive attention bias: same batch element + causal, else -1e30
    n_i = np.arange(N)[:, None]
    m_i = np.arange(HN)[None, :] % N
    allowed = ((m_i // T) == (n_i // T)) & ((m_i % T) <= (n_i % T))
    attn_bias = np.where(allowed, 0.0, NEG_BIAS).astype(np.float32)           # (N, HN)

    return jnp.asarray(head_sel), jnp.asarray(v_sel), jnp.asarray(attn_bias)


def cheekgpt_forward(idx, p):
    B, T = idx.shape
    C = N_EMBEDS
    N = B * T                      # all batch*seq rows in one block

    # ---- glue (trace-time / plain JAX): embedding gathers + weight prep ----
    # TODO(synk): embedding gathers stay in plain JAX; a DMA-gather kernel is
    # not worth it at this size.
    x = (p['tok_emb'][idx] + p['pos_emb'][:T]).reshape(N, C)

    head_sel, v_sel, attn_bias = _attention_constants(B, T)

    # Split fused QKV (PyTorch split order: k, q, v) so the kernel never
    # slices activations at lane offsets; keep biases / LN params 2-D.
    wk = p['wqkv'][:, :, :C]
    wq = p['wqkv'][:, :, C:2 * C]
    wv = p['wqkv'][:, :, 2 * C:]
    bk = p['bqkv'][:, None, :C]
    bq = p['bqkv'][:, None, C:2 * C]
    bv = p['bqkv'][:, None, 2 * C:]
    ln1g = p['ln1_g'][:, None, :]
    ln1b = p['ln1_b'][:, None, :]
    ln2g = p['ln2_g'][:, None, :]
    ln2b = p['ln2_b'][:, None, :]
    bproj = p['bproj'][:, None, :]
    b1 = p['b1'][:, None, :]
    b2 = p['b2'][:, None, :]
    lnfg = p['lnf_g']
    lnfb = p['lnf_b']
    # lane-dense (128-wide) LM head: zero-pad, slice back after the kernel
    whead_pad = jnp.zeros((C, VOCAB_PAD), jnp.float32).at[:, :VOCAB].set(p['whead'])
    bhead_pad = jnp.zeros((1, VOCAB_PAD), jnp.float32).at[:, :VOCAB].set(p['bhead'])

    def kernel(x_ref, hsel_ref, vsel_ref, bias_ref,
               ln1g_ref, ln1b_ref,
               wq_ref, bq_ref, wk_ref, bk_ref, wv_ref, bv_ref,
               wproj_ref, bproj_ref,
               ln2g_ref, ln2b_ref, w1_ref, b1_ref, w2_ref, b2_ref,
               lnfg_ref, lnfb_ref, whead_ref, bhead_ref,
               out_ref):
        xcur = x_ref[...]                                  # (N, C) f32
        hsel = hsel_ref[...]                               # (C, HN), scale folded in
        vsel = vsel_ref[...]                               # (HN, C)
        attn_bias = bias_ref[...]                          # (N, HN)

        def layernorm(z, g, b):
            mu = jnp.mean(z, axis=-1, keepdims=True)
            var = jnp.mean(jnp.square(z - mu), axis=-1, keepdims=True)
            return (z - mu) * jax.lax.rsqrt(var + LN_EPS) * g + b

        for l in range(N_LAYERS):
            # ---- multi-head attention (block-diagonal, all heads at once) ----
            h = layernorm(xcur, ln1g_ref[l], ln1b_ref[l])
            q = jnp.dot(h, wq_ref[l], preferred_element_type=jnp.float32) + bq_ref[l]
            k = jnp.dot(h, wk_ref[l], preferred_element_type=jnp.float32) + bk_ref[l]
            v = jnp.dot(h, wv_ref[l], preferred_element_type=jnp.float32) + bv_ref[l]

            # K_big[:, h*N:(h+1)*N] holds scale * k.T restricted to head h's channels
            k_big = jnp.concatenate([k.T] * N_HEADS, axis=1) * hsel          # (C, HN)
            scores = (jnp.dot(q, k_big, preferred_element_type=jnp.float32)
                      + attn_bias)                                           # (N, HN)
            scores = scores - jnp.max(scores, axis=-1, keepdims=True)
            pexp = jnp.exp(scores)                                           # masked -> 0

            v_big = jnp.concatenate([v] * N_HEADS, axis=0) * vsel            # (HN, C)
            num = jnp.dot(pexp, v_big, preferred_element_type=jnp.float32)   # (N, C)
            den = jnp.dot(pexp, vsel, preferred_element_type=jnp.float32)    # (N, C)
            attn = num / den
            attn = (jnp.dot(attn, wproj_ref[l], preferred_element_type=jnp.float32)
                    + bproj_ref[l])
            xcur = xcur + attn

            # ---- feed-forward ----
            h2 = layernorm(xcur, ln2g_ref[l], ln2b_ref[l])
            ff = jnp.maximum(
                jnp.dot(h2, w1_ref[l], preferred_element_type=jnp.float32) + b1_ref[l],
                0.0)
            ff = jnp.dot(ff, w2_ref[l], preferred_element_type=jnp.float32) + b2_ref[l]
            xcur = xcur + ff

        # ---- final LayerNorm + (lane-padded) LM head ----
        xf = layernorm(xcur, lnfg_ref[...], lnfb_ref[...])
        out_ref[...] = (jnp.dot(xf, whead_ref[...], preferred_element_type=jnp.float32)
                        + bhead_ref[...]).astype(out_ref.dtype)

    inputs = (x, head_sel, v_sel, attn_bias,
              ln1g, ln1b, wq, bq, wk, bk, wv, bv, p['wproj'], bproj,
              ln2g, ln2b, p['w1'], b1, p['w2'], b2, lnfg, lnfb,
              whead_pad, bhead_pad)

    def full_spec(a):
        nd = a.ndim
        return pl.BlockSpec(a.shape, lambda i, _nd=nd: (0,) * _nd)

    grid_spec = pl.GridSpec(
        grid=(1,),                                   # single step: whole batch
        in_specs=[full_spec(a) for a in inputs],
        out_specs=pl.BlockSpec((N, VOCAB_PAD), lambda i: (0, 0)),
    )

    logits_pad = pl.pallas_call(
        kernel,
        out_shape=jax.ShapeDtypeStruct((N, VOCAB_PAD), jnp.float32),
        grid_spec=grid_spec,
        # Single grid step -> one TensorCore; for large B, tile rows and mark
        # the row axis "parallel" to occupy v7x's second core.
        compiler_params=pltpu.CompilerParams(dimension_semantics=("arbitrary",)),
    )(*inputs)

    return logits_pad[:, :VOCAB].reshape(B, T, VOCAB)


def reference_forward(idx, p):
    """Pure-JAX reference mirroring the PyTorch module (target=None path)."""
    B, T = idx.shape
    C = N_EMBEDS
    x = p['tok_emb'][idx] + p['pos_emb'][:T]

    def ln(z, g, b):
        mu = z.mean(-1, keepdims=True)
        var = ((z - mu) ** 2).mean(-1, keepdims=True)
        return (z - mu) / jnp.sqrt(var + LN_EPS) * g + b

    mask = jnp.tril(jnp.ones((T, T), bool))
    for l in range(N_LAYERS):
        h = ln(x, p['ln1_g'][l], p['ln1_b'][l])
        qkv = h @ p['wqkv'][l] + p['bqkv'][l]
        k, q, v = qkv[..., :C], qkv[..., C:2 * C], qkv[..., 2 * C:]
        kh = k.reshape(B, T, N_HEADS, HEAD_DIM).transpose(0, 2, 1, 3)
        qh = q.reshape(B, T, N_HEADS, HEAD_DIM).transpose(0, 2, 1, 3)
        vh = v.reshape(B, T, N_HEADS, HEAD_DIM).transpose(0, 2, 1, 3)
        wei = (qh @ kh.transpose(0, 1, 3, 2)) / math.sqrt(HEAD_DIM)
        wei = jnp.where(mask, wei, -jnp.inf)
        wei = jax.nn.softmax(wei, -1)
        o = (wei @ vh).transpose(0, 2, 1, 3).reshape(B, T, C)
        x = x + o @ p['wproj'][l] + p['bproj'][l]
        h2 = ln(x, p['ln2_g'][l], p['ln2_b'][l])
        x = x + jnp.maximum(h2 @ p['w1'][l] + p['b1'][l], 0.0) @ p['w2'][l] + p['b2'][l]
    xf = ln(x, p['lnf_g'][0], p['lnf_b'][0])
    return xf @ p['whead'] + p['bhead'][0]


if __name__ == "__main__":
    key = jax.random.PRNGKey(0)
    pkey, ikey = jax.random.split(key)
    params = init_params(pkey)

    B, T = 2, BLOCK_SIZE
    idx = jax.random.randint(ikey, (B, T), 0, VOCAB, dtype=jnp.int32)

    logits = cheekgpt_forward(idx, params)
    logits = jax.block_until_ready(logits)

    ref = jax.block_until_ready(reference_forward(idx, params))
    assert logits.shape == (B, T, VOCAB)
    np.testing.assert_allclose(np.asarray(logits), np.asarray(ref),
                               rtol=1e-4, atol=1e-4)
    print("KERNEL_OK")
</pallas_src>

<mosaic_0001>
module attributes {stable_mosaic.version = 11 : i64} {
  func.func @kernel(%arg0: i32, %arg1: memref<16x32xf32, #tpu.memory_space<vmem>>, %arg2: memref<32x64xf32, #tpu.memory_space<vmem>>, %arg3: memref<64x32xf32, #tpu.memory_space<vmem>>, %arg4: memref<16x64xf32, #tpu.memory_space<vmem>>, %arg5: memref<2x1x32xf32, #tpu.memory_space<vmem>>, %arg6: memref<2x1x32xf32, #tpu.memory_space<vmem>>, %arg7: memref<2x32x32xf32, #tpu.memory_space<vmem>>, %arg8: memref<2x1x32xf32, #tpu.memory_space<vmem>>, %arg9: memref<2x32x32xf32, #tpu.memory_space<vmem>>, %arg10: memref<2x1x32xf32, #tpu.memory_space<vmem>>, %arg11: memref<2x32x32xf32, #tpu.memory_space<vmem>>, %arg12: memref<2x1x32xf32, #tpu.memory_space<vmem>>, %arg13: memref<2x32x32xf32, #tpu.memory_space<vmem>>, %arg14: memref<2x1x32xf32, #tpu.memory_space<vmem>>, %arg15: memref<2x1x32xf32, #tpu.memory_space<vmem>>, %arg16: memref<2x1x32xf32, #tpu.memory_space<vmem>>, %arg17: memref<2x32x128xf32, #tpu.memory_space<vmem>>, %arg18: memref<2x1x128xf32, #tpu.memory_space<vmem>>, %arg19: memref<2x128x32xf32, #tpu.memory_space<vmem>>, %arg20: memref<2x1x32xf32, #tpu.memory_space<vmem>>, %arg21: memref<1x32xf32, #tpu.memory_space<vmem>>, %arg22: memref<1x32xf32, #tpu.memory_space<vmem>>, %arg23: memref<32x128xf32, #tpu.memory_space<vmem>>, %arg24: memref<1x128xf32, #tpu.memory_space<vmem>>, %arg25: memref<16x128xf32, #tpu.memory_space<vmem>>) attributes {dimension_semantics = [#tpu.dimension_semantics<arbitrary>], iteration_bounds = array<i64: 1>, scalar_prefetch = 0 : i64, scratch_operands = 0 : i64, tpu.core_type = #tpu.core_type<tc>, window_params = [{pipeline_mode = #tpu.pipeline_mode<synchronous>, transform_indices = @transform_0, window_bounds = array<i64: 16, 32>}, {pipeline_mode = #tpu.pipeline_mode<synchronous>, transform_indices = @transform_1, window_bounds = array<i64: 32, 64>}, {pipeline_mode = #tpu.pipeline_mode<synchronous>, transform_indices = @transform_2, window_bounds = array<i64: 64, 32>}, {pipeline_mode = #tpu.pipeline_mode<synchronous>, transform_indices = @transform_3, window_bounds = array<i64: 16, 64>}, {pipeline_mode = #tpu.pipeline_mode<synchronous>, transform_indices = @transform_4, window_bounds = array<i64: 2, 1, 32>}, {pipeline_mode = #tpu.pipeline_mode<synchronous>, transform_indices = @transform_5, window_bounds = array<i64: 2, 1, 32>}, {pipeline_mode = #tpu.pipeline_mode<synchronous>, transform_indices = @transform_6, window_bounds = array<i64: 2, 32, 32>}, {pipeline_mode = #tpu.pipeline_mode<synchronous>, transform_indices = @transform_7, window_bounds = array<i64: 2, 1, 32>}, {pipeline_mode = #tpu.pipeline_mode<synchronous>, transform_indices = @transform_8, window_bounds = array<i64: 2, 32, 32>}, {pipeline_mode = #tpu.pipeline_mode<synchronous>, transform_indices = @transform_9, window_bounds = array<i64: 2, 1, 32>}, {pipeline_mode = #tpu.pipeline_mode<synchronous>, transform_indices = @transform_10, window_bounds = array<i64: 2, 32, 32>}, {pipeline_mode = #tpu.pipeline_mode<synchronous>, transform_indices = @transform_11, window_bounds = array<i64: 2, 1, 32>}, {pipeline_mode = #tpu.pipeline_mode<synchronous>, transform_indices = @transform_12, window_bounds = array<i64: 2, 32, 32>}, {pipeline_mode = #tpu.pipeline_mode<synchronous>, transform_indices = @transform_13, window_bounds = array<i64: 2, 1, 32>}, {pipeline_mode = #tpu.pipeline_mode<synchronous>, transform_indices = @transform_14, window_bounds = array<i64: 2, 1, 32>}, {pipeline_mode = #tpu.pipeline_mode<synchronous>, transform_indices = @transform_15, window_bounds = array<i64: 2, 1, 32>}, {pipeline_mode = #tpu.pipeline_mode<synchronous>, transform_indices = @transform_16, window_bounds = array<i64: 2, 32, 128>}, {pipeline_mode = #tpu.pipeline_mode<synchronous>, transform_indices = @transform_17, window_bounds = array<i64: 2, 1, 128>}, {pipeline_mode = #tpu.pipeline_mode<synchronous>, transform_indices = @transform_18, window_bounds = array<i64: 2, 128, 32>}, {pipeline_mode = #tpu.pipeline_mode<synchronous>, transform_indices = @transform_19, window_bounds = array<i64: 2, 1, 32>}, {pipeline_mode = #tpu.pipeline_mode<synchronous>, transform_indices = @transform_20, window_bounds = array<i64: 1, 32>}, {pipeline_mode = #tpu.pipeline_mode<synchronous>, transform_indices = @transform_21, window_bounds = array<i64: 1, 32>}, {pipeline_mode = #tpu.pipeline_mode<synchronous>, transform_indices = @transform_22, window_bounds = array<i64: 32, 128>}, {pipeline_mode = #tpu.pipeline_mode<synchronous>, transform_indices = @transform_23, window_bounds = array<i64: 1, 128>}, {pipeline_mode = #tpu.pipeline_mode<synchronous>, transform_indices = @transform_24, window_bounds = array<i64: 16, 128>}]} {
    %c0 = arith.constant 0 : index
    %c0_0 = arith.constant 0 : index
    %0 = vector.load %arg1[%c0, %c0_0] : memref<16x32xf32, #tpu.memory_space<vmem>>, vector<16x32xf32>
    %c0_1 = arith.constant 0 : index
    %c0_2 = arith.constant 0 : index
    %1 = vector.load %arg2[%c0_1, %c0_2] : memref<32x64xf32, #tpu.memory_space<vmem>>, vector<32x64xf32>
    %c0_3 = arith.constant 0 : index
    %c0_4 = arith.constant 0 : index
    %2 = vector.load %arg3[%c0_3, %c0_4] : memref<64x32xf32, #tpu.memory_space<vmem>>, vector<64x32xf32>
    %c0_5 = arith.constant 0 : index
    %c0_6 = arith.constant 0 : index
    %3 = vector.load %arg4[%c0_5, %c0_6] : memref<16x64xf32, #tpu.memory_space<vmem>>, vector<16x64xf32>
    %c0_7 = arith.constant 0 : index
    %c0_8 = arith.constant 0 : index
    %c0_9 = arith.constant 0 : index
    %4 = vector.load %arg5[%c0_7, %c0_8, %c0_9] : memref<2x1x32xf32, #tpu.memory_space<vmem>>, vector<1x1x32xf32>
    %5 = vector.shape_cast %4 : vector<1x1x32xf32> to vector<1x32xf32>
    %c0_10 = arith.constant 0 : index
    %c0_11 = arith.constant 0 : index
    %c0_12 = arith.constant 0 : index
    %6 = vector.load %arg6[%c0_10, %c0_11, %c0_12] : memref<2x1x32xf32, #tpu.memory_space<vmem>>, vector<1x1x32xf32>
    %7 = vector.shape_cast %6 : vector<1x1x32xf32> to vector<1x32xf32>
    %cst = arith.constant dense<0.000000e+00> : vector<16xf32>
    %8 = vector.multi_reduction <add>, %0, %cst [1] : vector<16x32xf32> to vector<16xf32>
    %9 = vector.shape_cast %8 : vector<16xf32> to vector<16x1xf32>
    %cst_13 = arith.constant 3.200000e+01 : f32
    %10 = vector.broadcast %cst_13 : f32 to vector<16x1xf32>
    %11 = arith.divf %9, %10 : vector<16x1xf32>
    %12 = vector.broadcast %11 : vector<16x1xf32> to vector<16x32xf32>
    %13 = arith.subf %0, %12 : vector<16x32xf32>
    %14 = arith.mulf %13, %13 : vector<16x32xf32>
    %cst_14 = arith.constant dense<0.000000e+00> : vector<16xf32>
    %15 = vector.multi_reduction <add>, %14, %cst_14 [1] : vector<16x32xf32> to vector<16xf32>
    %16 = vector.shape_cast %15 : vector<16xf32> to vector<16x1xf32>
    %cst_15 = arith.constant 3.200000e+01 : f32
    %17 = vector.broadcast %cst_15 : f32 to vector<16x1xf32>
    %18 = arith.divf %16, %17 : vector<16x1xf32>
    %19 = vector.broadcast %11 : vector<16x1xf32> to vector<16x32xf32>
    %20 = arith.subf %0, %19 : vector<16x32xf32>
    %cst_16 = arith.constant 9.99999974E-6 : f32
    %21 = vector.broadcast %cst_16 : f32 to vector<16x1xf32>
    %22 = arith.addf %18, %21 : vector<16x1xf32>
    %23 = math.rsqrt %22 : vector<16x1xf32>
    %24 = vector.broadcast %23 : vector<16x1xf32> to vector<16x32xf32>
    %25 = arith.mulf %20, %24 : vector<16x32xf32>
    %26 = vector.broadcast %5 : vector<1x32xf32> to vector<16x32xf32>
    %27 = arith.mulf %25, %26 : vector<16x32xf32>
    %28 = vector.broadcast %7 : vector<1x32xf32> to vector<16x32xf32>
    %29 = arith.addf %27, %28 : vector<16x32xf32>
    %c0_17 = arith.constant 0 : index
    %c0_18 = arith.constant 0 : index
    %c0_19 = arith.constant 0 : index
    %30 = vector.load %arg7[%c0_17, %c0_18, %c0_19] : memref<2x32x32xf32, #tpu.memory_space<vmem>>, vector<1x32x32xf32>
    %31 = vector.shape_cast %30 : vector<1x32x32xf32> to vector<32x32xf32>
    %cst_20 = arith.constant dense<0.000000e+00> : vector<16x32xf32>
    %32 = tpu.matmul %29, %31, %cst_20 {dimension_numbers = #tpu.dot_dimension_numbers<[1], [0], [0], [1], [0, 0, 1, 1], [], []>} : vector<16x32xf32>, vector<32x32xf32>, vector<16x32xf32> -> vector<16x32xf32>
    %c0_21 = arith.constant 0 : index
    %c0_22 = arith.constant 0 : index
    %c0_23 = arith.constant 0 : index
    %33 = vector.load %arg8[%c0_21, %c0_22, %c0_23] : memref<2x1x32xf32, #tpu.memory_space<vmem>>, vector<1x1x32xf32>
    %34 = vector.shape_cast %33 : vector<1x1x32xf32> to vector<1x32xf32>
    %35 = vector.broadcast %34 : vector<1x32xf32> to vector<16x32xf32>
    %36 = arith.addf %32, %35 : vector<16x32xf32>
    %c0_24 = arith.constant 0 : index
    %c0_25 = arith.constant 0 : index
    %c0_26 = arith.constant 0 : index
    %37 = vector.load %arg9[%c0_24, %c0_25, %c0_26] : memref<2x32x32xf32, #tpu.memory_space<vmem>>, vector<1x32x32xf32>
    %38 = vector.shape_cast %37 : vector<1x32x32xf32> to vector<32x32xf32>
    %cst_27 = arith.constant dense<0.000000e+00> : vector<16x32xf32>
    %39 = tpu.matmul %29, %38, %cst_27 {dimension_numbers = #tpu.dot_dimension_numbers<[1], [0], [0], [1], [0, 0, 1, 1], [], []>} : vector<16x32xf32>, vector<32x32xf32>, vector<16x32xf32> -> vector<16x32xf32>
    %c0_28 = arith.constant 0 : index
    %c0_29 = arith.constant 0 : index
    %c0_30 = arith.constant 0 : index
    %40 = vector.load %arg10[%c0_28, %c0_29, %c0_30] : memref<2x1x32xf32, #tpu.memory_space<vmem>>, vector<1x1x32xf32>
    %41 = vector.shape_cast %40 : vector<1x1x32xf32> to vector<1x32xf32>
    %42 = vector.broadcast %41 : vector<1x32xf32> to vector<16x32xf32>
    %43 = arith.addf %39, %42 : vector<16x32xf32>
    %c0_31 = arith.constant 0 : index
    %c0_32 = arith.constant 0 : index
    %c0_33 = arith.constant 0 : index
    %44 = vector.load %arg11[%c0_31, %c0_32, %c0_33] : memref<2x32x32xf32, #tpu.memory_space<vmem>>, vector<1x32x32xf32>
    %45 = vector.shape_cast %44 : vector<1x32x32xf32> to vector<32x32xf32>
    %cst_34 = arith.constant dense<0.000000e+00> : vector<16x32xf32>
    %46 = tpu.matmul %29, %45, %cst_34 {dimension_numbers = #tpu.dot_dimension_numbers<[1], [0], [0], [1], [0, 0, 1, 1], [], []>} : vector<16x32xf32>, vector<32x32xf32>, vector<16x32xf32> -> vector<16x32xf32>
    %c0_35 = arith.constant 0 : index
    %c0_36 = arith.constant 0 : index
    %c0_37 = arith.constant 0 : index
    %47 = vector.load %arg12[%c0_35, %c0_36, %c0_37] : memref<2x1x32xf32, #tpu.memory_space<vmem>>, vector<1x1x32xf32>
    %48 = vector.shape_cast %47 : vector<1x1x32xf32> to vector<1x32xf32>
    %49 = vector.broadcast %48 : vector<1x32xf32> to vector<16x32xf32>
    %50 = arith.addf %46, %49 : vector<16x32xf32>
    %51 = tpu.transpose %43, [1, 0] : vector<16x32xf32> -> vector<32x16xf32>
    %52 = tpu.concatenate %51, %51, %51, %51 in 1 : vector<32x16xf32>, vector<32x16xf32>, vector<32x16xf32>, vector<32x16xf32> -> vector<32x64xf32>
    %53 = arith.mulf %52, %1 : vector<32x64xf32>
    %cst_38 = arith.constant dense<0.000000e+00> : vector<16x64xf32>
    %54 = tpu.matmul %36, %53, %cst_38 {dimension_numbers = #tpu.dot_dimension_numbers<[1], [0], [0], [1], [0, 0, 1, 1], [], []>} : vector<16x32xf32>, vector<32x64xf32>, vector<16x64xf32> -> vector<16x64xf32>
    %55 = arith.addf %54, %3 : vector<16x64xf32>
    %cst_39 = arith.constant dense<0xFF800000> : vector<16xf32>
    %56 = vector.multi_reduction <maximumf>, %55, %cst_39 [1] : vector<16x64xf32> to vector<16xf32>
    %57 = vector.shape_cast %56 : vector<16xf32> to vector<16x1xf32>
    %58 = vector.broadcast %57 : vector<16x1xf32> to vector<16x64xf32>
    %59 = arith.subf %55, %58 : vector<16x64xf32>
    %60 = math.exp %59 : vector<16x64xf32>
    %61 = tpu.concatenate %50, %50, %50, %50 in 0 : vector<16x32xf32>, vector<16x32xf32>, vector<16x32xf32>, vector<16x32xf32> -> vector<64x32xf32>
    %62 = arith.mulf %61, %2 : vector<64x32xf32>
    %cst_40 = arith.constant dense<0.000000e+00> : vector<16x32xf32>
    %63 = tpu.matmul %60, %62, %cst_40 {dimension_numbers = #tpu.dot_dimension_numbers<[1], [0], [0], [1], [0, 0, 1, 1], [], []>} : vector<16x64xf32>, vector<64x32xf32>, vector<16x32xf32> -> vector<16x32xf32>
    %cst_41 = arith.constant dense<0.000000e+00> : vector<16x32xf32>
    %64 = tpu.matmul %60, %2, %cst_41 {dimension_numbers = #tpu.dot_dimension_numbers<[1], [0], [0], [1], [0, 0, 1, 1], [], []>} : vector<16x64xf32>, vector<64x32xf32>, vector<16x32xf32> -> vector<16x32xf32>
    %65 = arith.divf %63, %64 : vector<16x32xf32>
    %c0_42 = arith.constant 0 : index
    %c0_43 = arith.constant 0 : index
    %c0_44 = arith.constant 0 : index
    %66 = vector.load %arg13[%c0_42, %c0_43, %c0_44] : memref<2x32x32xf32, #tpu.memory_space<vmem>>, vector<1x32x32xf32>
    %67 = vector.shape_cast %66 : vector<1x32x32xf32> to vector<32x32xf32>
    %cst_45 = arith.constant dense<0.000000e+00> : vector<16x32xf32>
    %68 = tpu.matmul %65, %67, %cst_45 {dimension_numbers = #tpu.dot_dimension_numbers<[1], [0], [0], [1], [0, 0, 1, 1], [], []>} : vector<16x32xf32>, vector<32x32xf32>, vector<16x32xf32> -> vector<16x32xf32>
    %c0_46 = arith.constant 0 : index
    %c0_47 = arith.constant 0 : index
    %c0_48 = arith.constant 0 : index
    %69 = vector.load %arg14[%c0_46, %c0_47, %c0_48] : memref<2x1x32xf32, #tpu.memory_space<vmem>>, vector<1x1x32xf32>
    %70 = vector.shape_cast %69 : vector<1x1x32xf32> to vector<1x32xf32>
    %71 = vector.broadcast %70 : vector<1x32xf32> to vector<16x32xf32>
    %72 = arith.addf %68, %71 : vector<16x32xf32>
    %73 = arith.addf %0, %72 : vector<16x32xf32>
    %c0_49 = arith.constant 0 : index
    %c0_50 = arith.constant 0 : index
    %c0_51 = arith.constant 0 : index
    %74 = vector.load %arg15[%c0_49, %c0_50, %c0_51] : memref<2x1x32xf32, #tpu.memory_space<vmem>>, vector<1x1x32xf32>
    %75 = vector.shape_cast %74 : vector<1x1x32xf32> to vector<1x32xf32>
    %c0_52 = arith.constant 0 : index
    %c0_53 = arith.constant 0 : index
    %c0_54 = arith.constant 0 : index
    %76 = vector.load %arg16[%c0_52, %c0_53, %c0_54] : memref<2x1x32xf32, #tpu.memory_space<vmem>>, vector<1x1x32xf32>
    %77 = vector.shape_cast %76 : vector<1x1x32xf32> to vector<1x32xf32>
    %cst_55 = arith.constant dense<0.000000e+00> : vector<16xf32>
    %78 = vector.multi_reduction <add>, %73, %cst_55 [1] : vector<16x32xf32> to vector<16xf32>
    %79 = vector.shape_cast %78 : vector<16xf32> to vector<16x1xf32>
    %cst_56 = arith.constant 3.200000e+01 : f32
    %80 = vector.broadcast %cst_56 : f32 to vector<16x1xf32>
    %81 = arith.divf %79, %80 : vector<16x1xf32>
    %82 = vector.broadcast %81 : vector<16x1xf32> to vector<16x32xf32>
    %83 = arith.subf %73, %82 : vector<16x32xf32>
    %84 = arith.mulf %83, %83 : vector<16x32xf32>
    %cst_57 = arith.constant dense<0.000000e+00> : vector<16xf32>
    %85 = vector.multi_reduction <add>, %84, %cst_57 [1] : vector<16x32xf32> to vector<16xf32>
    %86 = vector.shape_cast %85 : vector<16xf32> to vector<16x1xf32>
    %cst_58 = arith.constant 3.200000e+01 : f32
    %87 = vector.broadcast %cst_58 : f32 to vector<16x1xf32>
    %88 = arith.divf %86, %87 : vector<16x1xf32>
    %89 = vector.broadcast %81 : vector<16x1xf32> to vector<16x32xf32>
    %90 = arith.subf %73, %89 : vector<16x32xf32>
    %cst_59 = arith.constant 9.99999974E-6 : f32
    %91 = vector.broadcast %cst_59 : f32 to vector<16x1xf32>
    %92 = arith.addf %88, %91 : vector<16x1xf32>
    %93 = math.rsqrt %92 : vector<16x1xf32>
    %94 = vector.broadcast %93 : vector<16x1xf32> to vector<16x32xf32>
    %95 = arith.mulf %90, %94 : vector<16x32xf32>
    %96 = vector.broadcast %75 : vector<1x32xf32> to vector<16x32xf32>
    %97 = arith.mulf %95, %96 : vector<16x32xf32>
    %98 = vector.broadcast %77 : vector<1x32xf32> to vector<16x32xf32>
    %99 = arith.addf %97, %98 : vector<16x32xf32>
    %c0_60 = arith.constant 0 : index
    %c0_61 = arith.constant 0 : index
    %c0_62 = arith.constant 0 : index
    %100 = vector.load %arg17[%c0_60, %c0_61, %c0_62] : memref<2x32x128xf32, #tpu.memory_space<vmem>>, vector<1x32x128xf32>
    %101 = vector.shape_cast %100 : vector<1x32x128xf32> to vector<32x128xf32>
    %cst_63 = arith.constant dense<0.000000e+00> : vector<16x128xf32>
    %102 = tpu.matmul %99, %101, %cst_63 {dimension_numbers = #tpu.dot_dimension_numbers<[1], [0], [0], [1], [0, 0, 1, 1], [], []>} : vector<16x32xf32>, vector<32x128xf32>, vector<16x128xf32> -> vector<16x128xf32>
    %c0_64 = arith.constant 0 : index
    %c0_65 = arith.constant 0 : index
    %c0_66 = arith.constant 0 : index
    %103 = vector.load %arg18[%c0_64, %c0_65, %c0_66] : memref<2x1x128xf32, #tpu.memory_space<vmem>>, vector<1x1x128xf32>
    %104 = vector.shape_cast %103 : vector<1x1x128xf32> to vector<1x128xf32>
    %105 = vector.broadcast %104 : vector<1x128xf32> to vector<16x128xf32>
    %106 = arith.addf %102, %105 : vector<16x128xf32>
    %cst_67 = arith.constant 0.000000e+00 : f32
    %107 = vector.broadcast %cst_67 : f32 to vector<16x128xf32>
    %108 = arith.maximumf %106, %107 : vector<16x128xf32>
    %c0_68 = arith.constant 0 : index
    %c0_69 = arith.constant 0 : index
    %c0_70 = arith.constant 0 : index
    %109 = vector.load %arg19[%c0_68, %c0_69, %c0_70] : memref<2x128x32xf32, #tpu.memory_space<vmem>>, vector<1x128x32xf32>
    %110 = vector.shape_cast %109 : vector<1x128x32xf32> to vector<128x32xf32>
    %cst_71 = arith.constant dense<0.000000e+00> : vector<16x32xf32>
    %111 = tpu.matmul %108, %110, %cst_71 {dimension_numbers = #tpu.dot_dimension_numbers<[1], [0], [0], [1], [0, 0, 1, 1], [], []>} : vector<16x128xf32>, vector<128x32xf32>, vector<16x32xf32> -> vector<16x32xf32>
    %c0_72 = arith.constant 0 : index
    %c0_73 = arith.constant 0 : index
    %c0_74 = arith.constant 0 : index
    %112 = vector.load %arg20[%c0_72, %c0_73, %c0_74] : memref<2x1x32xf32, #tpu.memory_space<vmem>>, vector<1x1x32xf32>
    %113 = vector.shape_cast %112 : vector<1x1x32xf32> to vector<1x32xf32>
    %114 = vector.broadcast %113 : vector<1x32xf32> to vector<16x32xf32>
    %115 = arith.addf %111, %114 : vector<16x32xf32>
    %116 = arith.addf %73, %115 : vector<16x32xf32>
    %c1 = arith.constant 1 : index
    %c0_75 = arith.constant 0 : index
    %c0_76 = arith.constant 0 : index
    %117 = vector.load %arg5[%c1, %c0_75, %c0_76] : memref<2x1x32xf32, #tpu.memory_space<vmem>>, vector<1x1x32xf32>
    %118 = vector.shape_cast %117 : vector<1x1x32xf32> to vector<1x32xf32>
    %c1_77 = arith.constant 1 : index
    %c0_78 = arith.constant 0 : index
    %c0_79 = arith.constant 0 : index
    %119 = vector.load %arg6[%c1_77, %c0_78, %c0_79] : memref<2x1x32xf32, #tpu.memory_space<vmem>>, vector<1x1x32xf32>
    %120 = vector.shape_cast %119 : vector<1x1x32xf32> to vector<1x32xf32>
    %cst_80 = arith.constant dense<0.000000e+00> : vector<16xf32>
    %121 = vector.multi_reduction <add>, %116, %cst_80 [1] : vector<16x32xf32> to vector<16xf32>
    %122 = vector.shape_cast %121 : vector<16xf32> to vector<16x1xf32>
    %cst_81 = arith.constant 3.200000e+01 : f32
    %123 = vector.broadcast %cst_81 : f32 to vector<16x1xf32>
    %124 = arith.divf %122, %123 : vector<16x1xf32>
    %125 = vector.broadcast %124 : vector<16x1xf32> to vector<16x32xf32>
    %126 = arith.subf %116, %125 : vector<16x32xf32>
    %127 = arith.mulf %126, %126 : vector<16x32xf32>
    %cst_82 = arith.constant dense<0.000000e+00> : vector<16xf32>
    %128 = vector.multi_reduction <add>, %127, %cst_82 [1] : vector<16x32xf32> to vector<16xf32>
    %129 = vector.shape_cast %128 : vector<16xf32> to vector<16x1xf32>
    %cst_83 = arith.constant 3.200000e+01 : f32
    %130 = vector.broadcast %cst_83 : f32 to vector<16x1xf32>
    %131 = arith.divf %129, %130 : vector<16x1xf32>
    %132 = vector.broadcast %124 : vector<16x1xf32> to vector<16x32xf32>
    %133 = arith.subf %116, %132 : vector<16x32xf32>
    %cst_84 = arith.constant 9.99999974E-6 : f32
    %134 = vector.broadcast %cst_84 : f32 to vector<16x1xf32>
    %135 = arith.addf %131, %134 : vector<16x1xf32>
    %136 = math.rsqrt %135 : vector<16x1xf32>
    %137 = vector.broadcast %136 : vector<16x1xf32> to vector<16x32xf32>
    %138 = arith.mulf %133, %137 : vector<16x32xf32>
    %139 = vector.broadcast %118 : vector<1x32xf32> to vector<16x32xf32>
    %140 = arith.mulf %138, %139 : vector<16x32xf32>
    %141 = vector.broadcast %120 : vector<1x32xf32> to vector<16x32xf32>
    %142 = arith.addf %140, %141 : vector<16x32xf32>
    %c1_85 = arith.constant 1 : index
    %c0_86 = arith.constant 0 : index
    %c0_87 = arith.constant 0 : index
    %143 = vector.load %arg7[%c1_85, %c0_86, %c0_87] : memref<2x32x32xf32, #tpu.memory_space<vmem>>, vector<1x32x32xf32>
    %144 = vector.shape_cast %143 : vector<1x32x32xf32> to vector<32x32xf32>
    %cst_88 = arith.constant dense<0.000000e+00> : vector<16x32xf32>
    %145 = tpu.matmul %142, %144, %cst_88 {dimension_numbers = #tpu.dot_dimension_numbers<[1], [0], [0], [1], [0, 0, 1, 1], [], []>} : vector<16x32xf32>, vector<32x32xf32>, vector<16x32xf32> -> vector<16x32xf32>
    %c1_89 = arith.constant 1 : index
    %c0_90 = arith.constant 0 : index
    %c0_91 = arith.constant 0 : index
    %146 = vector.load %arg8[%c1_89, %c0_90, %c0_91] : memref<2x1x32xf32, #tpu.memory_space<vmem>>, vector<1x1x32xf32>
    %147 = vector.shape_cast %146 : vector<1x1x32xf32> to vector<1x32xf32>
    %148 = vector.broadcast %147 : vector<1x32xf32> to vector<16x32xf32>
    %149 = arith.addf %145, %148 : vector<16x32xf32>
    %c1_92 = arith.constant 1 : index
    %c0_93 = arith.constant 0 : index
    %c0_94 = arith.constant 0 : index
    %150 = vector.load %arg9[%c1_92, %c0_93, %c0_94] : memref<2x32x32xf32, #tpu.memory_space<vmem>>, vector<1x32x32xf32>
    %151 = vector.shape_cast %150 : vector<1x32x32xf32> to vector<32x32xf32>
    %cst_95 = arith.constant dense<0.000000e+00> : vector<16x32xf32>
    %152 = tpu.matmul %142, %151, %cst_95 {dimension_numbers = #tpu.dot_dimension_numbers<[1], [0], [0], [1], [0, 0, 1, 1], [], []>} : vector<16x32xf32>, vector<32x32xf32>, vector<16x32xf32> -> vector<16x32xf32>
    %c1_96 = arith.constant 1 : index
    %c0_97 = arith.constant 0 : index
    %c0_98 = arith.constant 0 : index
    %153 = vector.load %arg10[%c1_96, %c0_97, %c0_98] : memref<2x1x32xf32, #tpu.memory_space<vmem>>, vector<1x1x32xf32>
    %154 = vector.shape_cast %153 : vector<1x1x32xf32> to vector<1x32xf32>
    %155 = vector.broadcast %154 : vector<1x32xf32> to vector<16x32xf32>
    %156 = arith.addf %152, %155 : vector<16x32xf32>
    %c1_99 = arith.constant 1 : index
    %c0_100 = arith.constant 0 : index
    %c0_101 = arith.constant 0 : index
    %157 = vector.load %arg11[%c1_99, %c0_100, %c0_101] : memref<2x32x32xf32, #tpu.memory_space<vmem>>, vector<1x32x32xf32>
    %158 = vector.shape_cast %157 : vector<1x32x32xf32> to vector<32x32xf32>
    %cst_102 = arith.constant dense<0.000000e+00> : vector<16x32xf32>
    %159 = tpu.matmul %142, %158, %cst_102 {dimension_numbers = #tpu.dot_dimension_numbers<[1], [0], [0], [1], [0, 0, 1, 1], [], []>} : vector<16x32xf32>, vector<32x32xf32>, vector<16x32xf32> -> vector<16x32xf32>
    %c1_103 = arith.constant 1 : index
    %c0_104 = arith.constant 0 : index
    %c0_105 = arith.constant 0 : index
    %160 = vector.load %arg12[%c1_103, %c0_104, %c0_105] : memref<2x1x32xf32, #tpu.memory_space<vmem>>, vector<1x1x32xf32>
    %161 = vector.shape_cast %160 : vector<1x1x32xf32> to vector<1x32xf32>
    %162 = vector.broadcast %161 : vector<1x32xf32> to vector<16x32xf32>
    %163 = arith.addf %159, %162 : vector<16x32xf32>
    %164 = tpu.transpose %156, [1, 0] : vector<16x32xf32> -> vector<32x16xf32>
    %165 = tpu.concatenate %164, %164, %164, %164 in 1 : vector<32x16xf32>, vector<32x16xf32>, vector<32x16xf32>, vector<32x16xf32> -> vector<32x64xf32>
    %166 = arith.mulf %165, %1 : vector<32x64xf32>
    %cst_106 = arith.constant dense<0.000000e+00> : vector<16x64xf32>
    %167 = tpu.matmul %149, %166, %cst_106 {dimension_numbers = #tpu.dot_dimension_numbers<[1], [0], [0], [1], [0, 0, 1, 1], [], []>} : vector<16x32xf32>, vector<32x64xf32>, vector<16x64xf32> -> vector<16x64xf32>
    %168 = arith.addf %167, %3 : vector<16x64xf32>
    %cst_107 = arith.constant dense<0xFF800000> : vector<16xf32>
    %169 = vector.multi_reduction <maximumf>, %168, %cst_107 [1] : vector<16x64xf32> to vector<16xf32>
    %170 = vector.shape_cast %169 : vector<16xf32> to vector<16x1xf32>
    %171 = vector.broadcast %170 : vector<16x1xf32> to vector<16x64xf32>
    %172 = arith.subf %168, %171 : vector<16x64xf32>
    %173 = math.exp %172 : vector<16x64xf32>
    %174 = tpu.concatenate %163, %163, %163, %163 in 0 : vector<16x32xf32>, vector<16x32xf32>, vector<16x32xf32>, vector<16x32xf32> -> vector<64x32xf32>
    %175 = arith.mulf %174, %2 : vector<64x32xf32>
    %cst_108 = arith.constant dense<0.000000e+00> : vector<16x32xf32>
    %176 = tpu.matmul %173, %175, %cst_108 {dimension_numbers = #tpu.dot_dimension_numbers<[1], [0], [0], [1], [0, 0, 1, 1], [], []>} : vector<16x64xf32>, vector<64x32xf32>, vector<16x32xf32> -> vector<16x32xf32>
    %cst_109 = arith.constant dense<0.000000e+00> : vector<16x32xf32>
    %177 = tpu.matmul %173, %2, %cst_109 {dimension_numbers = #tpu.dot_dimension_numbers<[1], [0], [0], [1], [0, 0, 1, 1], [], []>} : vector<16x64xf32>, vector<64x32xf32>, vector<16x32xf32> -> vector<16x32xf32>
    %178 = arith.divf %176, %177 : vector<16x32xf32>
    %c1_110 = arith.constant 1 : index
    %c0_111 = arith.constant 0 : index
    %c0_112 = arith.constant 0 : index
    %179 = vector.load %arg13[%c1_110, %c0_111, %c0_112] : memref<2x32x32xf32, #tpu.memory_space<vmem>>, vector<1x32x32xf32>
    %180 = vector.shape_cast %179 : vector<1x32x32xf32> to vector<32x32xf32>
    %cst_113 = arith.constant dense<0.000000e+00> : vector<16x32xf32>
    %181 = tpu.matmul %178, %180, %cst_113 {dimension_numbers = #tpu.dot_dimension_numbers<[1], [0], [0], [1], [0, 0, 1, 1], [], []>} : vector<16x32xf32>, vector<32x32xf32>, vector<16x32xf32> -> vector<16x32xf32>
    %c1_114 = arith.constant 1 : index
    %c0_115 = arith.constant 0 : index
    %c0_116 = arith.constant 0 : index
    %182 = vector.load %arg14[%c1_114, %c0_115, %c0_116] : memref<2x1x32xf32, #tpu.memory_space<vmem>>, vector<1x1x32xf32>
    %183 = vector.shape_cast %182 : vector<1x1x32xf32> to vector<1x32xf32>
    %184 = vector.broadcast %183 : vector<1x32xf32> to vector<16x32xf32>
    %185 = arith.addf %181, %184 : vector<16x32xf32>
    %186 = arith.addf %116, %185 : vector<16x32xf32>
    %c1_117 = arith.constant 1 : index
    %c0_118 = arith.constant 0 : index
    %c0_119 = arith.constant 0 : index
    %187 = vector.load %arg15[%c1_117, %c0_118, %c0_119] : memref<2x1x32xf32, #tpu.memory_space<vmem>>, vector<1x1x32xf32>
    %188 = vector.shape_cast %187 : vector<1x1x32xf32> to vector<1x32xf32>
    %c1_120 = arith.constant 1 : index
    %c0_121 = arith.constant 0 : index
    %c0_122 = arith.constant 0 : index
    %189 = vector.load %arg16[%c1_120, %c0_121, %c0_122] : memref<2x1x32xf32, #tpu.memory_space<vmem>>, vector<1x1x32xf32>
    %190 = vector.shape_cast %189 : vector<1x1x32xf32> to vector<1x32xf32>
    %cst_123 = arith.constant dense<0.000000e+00> : vector<16xf32>
    %191 = vector.multi_reduction <add>, %186, %cst_123 [1] : vector<16x32xf32> to vector<16xf32>
    %192 = vector.shape_cast %191 : vector<16xf32> to vector<16x1xf32>
    %cst_124 = arith.constant 3.200000e+01 : f32
    %193 = vector.broadcast %cst_124 : f32 to vector<16x1xf32>
    %194 = arith.divf %192, %193 : vector<16x1xf32>
    %195 = vector.broadcast %194 : vector<16x1xf32> to vector<16x32xf32>
    %196 = arith.subf %186, %195 : vector<16x32xf32>
    %197 = arith.mulf %196, %196 : vector<16x32xf32>
    %cst_125 = arith.constant dense<0.000000e+00> : vector<16xf32>
    %198 = vector.multi_reduction <add>, %197, %cst_125 [1] : vector<16x32xf32> to vector<16xf32>
    %199 = vector.shape_cast %198 : vector<16xf32> to vector<16x1xf32>
    %cst_126 = arith.constant 3.200000e+01 : f32
    %200 = vector.broadcast %cst_126 : f32 to vector<16x1xf32>
    %201 = arith.divf %199, %200 : vector<16x1xf32>
    %202 = vector.broadcast %194 : vector<16x1xf32> to vector<16x32xf32>
    %203 = arith.subf %186, %202 : vector<16x32xf32>
    %cst_127 = arith.constant 9.99999974E-6 : f32
    %204 = vector.broadcast %cst_127 : f32 to vector<16x1xf32>
    %205 = arith.addf %201, %204 : vector<16x1xf32>
    %206 = math.rsqrt %205 : vector<16x1xf32>
    %207 = vector.broadcast %206 : vector<16x1xf32> to vector<16x32xf32>
    %208 = arith.mulf %203, %207 : vector<16x32xf32>
    %209 = vector.broadcast %188 : vector<1x32xf32> to vector<16x32xf32>
    %210 = arith.mulf %208, %209 : vector<16x32xf32>
    %211 = vector.broadcast %190 : vector<1x32xf32> to vector<16x32xf32>
    %212 = arith.addf %210, %211 : vector<16x32xf32>
    %c1_128 = arith.constant 1 : index
    %c0_129 = arith.constant 0 : index
    %c0_130 = arith.constant 0 : index
    %213 = vector.load %arg17[%c1_128, %c0_129, %c0_130] : memref<2x32x128xf32, #tpu.memory_space<vmem>>, vector<1x32x128xf32>
    %214 = vector.shape_cast %213 : vector<1x32x128xf32> to vector<32x128xf32>
    %cst_131 = arith.constant dense<0.000000e+00> : vector<16x128xf32>
    %215 = tpu.matmul %212, %214, %cst_131 {dimension_numbers = #tpu.dot_dimension_numbers<[1], [0], [0], [1], [0, 0, 1, 1], [], []>} : vector<16x32xf32>, vector<32x128xf32>, vector<16x128xf32> -> vector<16x128xf32>
    %c1_132 = arith.constant 1 : index
    %c0_133 = arith.constant 0 : index
    %c0_134 = arith.constant 0 : index
    %216 = vector.load %arg18[%c1_132, %c0_133, %c0_134] : memref<2x1x128xf32, #tpu.memory_space<vmem>>, vector<1x1x128xf32>
    %217 = vector.shape_cast %216 : vector<1x1x128xf32> to vector<1x128xf32>
    %218 = vector.broadcast %217 : vector<1x128xf32> to vector<16x128xf32>
    %219 = arith.addf %215, %218 : vector<16x128xf32>
    %cst_135 = arith.constant 0.000000e+00 : f32
    %220 = vector.broadcast %cst_135 : f32 to vector<16x128xf32>
    %221 = arith.maximumf %219, %220 : vector<16x128xf32>
    %c1_136 = arith.constant 1 : index
    %c0_137 = arith.constant 0 : index
    %c0_138 = arith.constant 0 : index
    %222 = vector.load %arg19[%c1_136, %c0_137, %c0_138] : memref<2x128x32xf32, #tpu.memory_space<vmem>>, vector<1x128x32xf32>
    %223 = vector.shape_cast %222 : vector<1x128x32xf32> to vector<128x32xf32>
    %cst_139 = arith.constant dense<0.000000e+00> : vector<16x32xf32>
    %224 = tpu.matmul %221, %223, %cst_139 {dimension_numbers = #tpu.dot_dimension_numbers<[1], [0], [0], [1], [0, 0, 1, 1], [], []>} : vector<16x128xf32>, vector<128x32xf32>, vector<16x32xf32> -> vector<16x32xf32>
    %c1_140 = arith.constant 1 : index
    %c0_141 = arith.constant 0 : index
    %c0_142 = arith.constant 0 : index
    %225 = vector.load %arg20[%c1_140, %c0_141, %c0_142] : memref<2x1x32xf32, #tpu.memory_space<vmem>>, vector<1x1x32xf32>
    %226 = vector.shape_cast %225 : vector<1x1x32xf32> to vector<1x32xf32>
    %227 = vector.broadcast %226 : vector<1x32xf32> to vector<16x32xf32>
    %228 = arith.addf %224, %227 : vector<16x32xf32>
    %229 = arith.addf %186, %228 : vector<16x32xf32>
    %c0_143 = arith.constant 0 : index
    %c0_144 = arith.constant 0 : index
    %230 = vector.load %arg21[%c0_143, %c0_144] : memref<1x32xf32, #tpu.memory_space<vmem>>, vector<1x32xf32>
    %c0_145 = arith.constant 0 : index
    %c0_146 = arith.constant 0 : index
    %231 = vector.load %arg22[%c0_145, %c0_146] : memref<1x32xf32, #tpu.memory_space<vmem>>, vector<1x32xf32>
    %cst_147 = arith.constant dense<0.000000e+00> : vector<16xf32>
    %232 = vector.multi_reduction <add>, %229, %cst_147 [1] : vector<16x32xf32> to vector<16xf32>
    %233 = vector.shape_cast %232 : vector<16xf32> to vector<16x1xf32>
    %cst_148 = arith.constant 3.200000e+01 : f32
    %234 = vector.broadcast %cst_148 : f32 to vector<16x1xf32>
    %235 = arith.divf %233, %234 : vector<16x1xf32>
    %236 = vector.broadcast %235 : vector<16x1xf32> to vector<16x32xf32>
    %237 = arith.subf %229, %236 : vector<16x32xf32>
    %238 = arith.mulf %237, %237 : vector<16x32xf32>
    %cst_149 = arith.constant dense<0.000000e+00> : vector<16xf32>
    %239 = vector.multi_reduction <add>, %238, %cst_149 [1] : vector<16x32xf32> to vector<16xf32>
    %240 = vector.shape_cast %239 : vector<16xf32> to vector<16x1xf32>
    %cst_150 = arith.constant 3.200000e+01 : f32
    %241 = vector.broadcast %cst_150 : f32 to vector<16x1xf32>
    %242 = arith.divf %240, %241 : vector<16x1xf32>
    %243 = vector.broadcast %235 : vector<16x1xf32> to vector<16x32xf32>
    %244 = arith.subf %229, %243 : vector<16x32xf32>
    %cst_151 = arith.constant 9.99999974E-6 : f32
    %245 = vector.broadcast %cst_151 : f32 to vector<16x1xf32>
    %246 = arith.addf %242, %245 : vector<16x1xf32>
    %247 = math.rsqrt %246 : vector<16x1xf32>
    %248 = vector.broadcast %247 : vector<16x1xf32> to vector<16x32xf32>
    %249 = arith.mulf %244, %248 : vector<16x32xf32>
    %250 = vector.broadcast %230 : vector<1x32xf32> to vector<16x32xf32>
    %251 = arith.mulf %249, %250 : vector<16x32xf32>
    %252 = vector.broadcast %231 : vector<1x32xf32> to vector<16x32xf32>
    %253 = arith.addf %251, %252 : vector<16x32xf32>
    %c0_152 = arith.constant 0 : index
    %c0_153 = arith.constant 0 : index
    %254 = vector.load %arg23[%c0_152, %c0_153] : memref<32x128xf32, #tpu.memory_space<vmem>>, vector<32x128xf32>
    %cst_154 = arith.constant dense<0.000000e+00> : vector<16x128xf32>
    %255 = tpu.matmul %253, %254, %cst_154 {dimension_numbers = #tpu.dot_dimension_numbers<[1], [0], [0], [1], [0, 0, 1, 1], [], []>} : vector<16x32xf32>, vector<32x128xf32>, vector<16x128xf32> -> vector<16x128xf32>
    %c0_155 = arith.constant 0 : index
    %c0_156 = arith.constant 0 : index
    %256 = vector.load %arg24[%c0_155, %c0_156] : memref<1x128xf32, #tpu.memory_space<vmem>>, vector<1x128xf32>
    %257 = vector.broadcast %256 : vector<1x128xf32> to vector<16x128xf32>
    %258 = arith.addf %255, %257 : vector<16x128xf32>
    %c0_157 = arith.constant 0 : index
    %c0_158 = arith.constant 0 : index
    %259 = vector.load %arg25[%c0_157, %c0_158] : memref<16x128xf32, #tpu.memory_space<vmem>>, vector<16x128xf32>
    tpu.vector_store %arg25[%c0_157, %c0_158], %258 {strides = array<i32>} : memref<16x128xf32, #tpu.memory_space<vmem>>, vector<16x128xf32>,
    return
  }
  func.func @transform_0(%arg0: i32) -> (i32, i32) {
    %c0_i32 = arith.constant 0 : i32
    %c0_i32_0 = arith.constant 0 : i32
    %c0_i32_1 = arith.constant 0 : i32
    return %c0_i32, %c0_i32_0 : i32, i32
  }
  func.func @transform_1(%arg0: i32) -> (i32, i32) {
    %c0_i32 = arith.constant 0 : i32
    %c0_i32_0 = arith.constant 0 : i32
    %c0_i32_1 = arith.constant 0 : i32
    return %c0_i32, %c0_i32_0 : i32, i32
  }
  func.func @transform_2(%arg0: i32) -> (i32, i32) {
    %c0_i32 = arith.constant 0 : i32
    %c0_i32_0 = arith.constant 0 : i32
    %c0_i32_1 = arith.constant 0 : i32
    return %c0_i32, %c0_i32_0 : i32, i32
  }
  func.func @transform_3(%arg0: i32) -> (i32, i32) {
    %c0_i32 = arith.constant 0 : i32
    %c0_i32_0 = arith.constant 0 : i32
    %c0_i32_1 = arith.constant 0 : i32
    return %c0_i32, %c0_i32_0 : i32, i32
  }
  func.func @transform_4(%arg0: i32) -> (i32, i32, i32) {
    %c0_i32 = arith.constant 0 : i32
    %c0_i32_0 = arith.constant 0 : i32
    %c0_i32_1 = arith.constant 0 : i32
    %c0_i32_2 = arith.constant 0 : i32
    return %c0_i32, %c0_i32_0, %c0_i32_1 : i32, i32, i32
  }
  func.func @transform_5(%arg0: i32) -> (i32, i32, i32) {
    %c0_i32 = arith.constant 0 : i32
    %c0_i32_0 = arith.constant 0 : i32
    %c0_i32_1 = arith.constant 0 : i32
    %c0_i32_2 = arith.constant 0 : i32
    return %c0_i32, %c0_i32_0, %c0_i32_1 : i32, i32, i32
  }
  func.func @transform_6(%arg0: i32) -> (i32, i32, i32) {
    %c0_i32 = arith.constant 0 : i32
    %c0_i32_0 = arith.constant 0 : i32
    %c0_i32_1 = arith.constant 0 : i32
    %c0_i32_2 = arith.constant 0 : i32
    return %c0_i32, %c0_i32_0, %c0_i32_1 : i32, i32, i32
  }
  func.func @transform_7(%arg0: i32) -> (i32, i32, i32) {
    %c0_i32 = arith.constant 0 : i32
    %c0_i32_0 = arith.constant 0 : i32
    %c0_i32_1 = arith.constant 0 : i32
    %c0_i32_2 = arith.constant 0 : i32
    return %c0_i32, %c0_i32_0, %c0_i32_1 : i32, i32, i32
  }
  func.func @transform_8(%arg0: i32) -> (i32, i32, i32) {
    %c0_i32 = arith.constant 0 : i32
    %c0_i32_0 = arith.constant 0 : i32
    %c0_i32_1 = arith.constant 0 : i32
    %c0_i32_2 = arith.constant 0 : i32
    return %c0_i32, %c0_i32_0, %c0_i32_1 : i32, i32, i32
  }
  func.func @transform_9(%arg0: i32) -> (i32, i32, i32) {
    %c0_i32 = arith.constant 0 : i32
    %c0_i32_0 = arith.constant 0 : i32
    %c0_i32_1 = arith.constant 0 : i32
    %c0_i32_2 = arith.constant 0 : i32
    return %c0_i32, %c0_i32_0, %c0_i32_1 : i32, i32, i32
  }
  func.func @transform_10(%arg0: i32) -> (i32, i32, i32) {
    %c0_i32 = arith.constant 0 : i32
    %c0_i32_0 = arith.constant 0 : i32
    %c0_i32_1 = arith.constant 0 : i32
    %c0_i32_2 = arith.constant 0 : i32
    return %c0_i32, %c0_i32_0, %c0_i32_1 : i32, i32, i32
  }
  func.func @transform_11(%arg0: i32) -> (i32, i32, i32) {
    %c0_i32 = arith.constant 0 : i32
    %c0_i32_0 = arith.constant 0 : i32
    %c0_i32_1 = arith.constant 0 : i32
    %c0_i32_2 = arith.constant 0 : i32
    return %c0_i32, %c0_i32_0, %c0_i32_1 : i32, i32, i32
  }
  func.func @transform_12(%arg0: i32) -> (i32, i32, i32) {
    %c0_i32 = arith.constant 0 : i32
    %c0_i32_0 = arith.constant 0 : i32
    %c0_i32_1 = arith.constant 0 : i32
    %c0_i32_2 = arith.constant 0 : i32
    return %c0_i32, %c0_i32_0, %c0_i32_1 : i32, i32, i32
  }
  func.func @transform_13(%arg0: i32) -> (i32, i32, i32) {
    %c0_i32 = arith.constant 0 : i32
    %c0_i32_0 = arith.constant 0 : i32
    %c0_i32_1 = arith.constant 0 : i32
    %c0_i32_2 = arith.constant 0 : i32
    return %c0_i32, %c0_i32_0, %c0_i32_1 : i32, i32, i32
  }
  func.func @transform_14(%arg0: i32) -> (i32, i32, i32) {
    %c0_i32 = arith.constant 0 : i32
    %c0_i32_0 = arith.constant 0 : i32
    %c0_i32_1 = arith.constant 0 : i32
    %c0_i32_2 = arith.constant 0 : i32
    return %c0_i32, %c0_i32_0, %c0_i32_1 : i32, i32, i32
  }
  func.func @transform_15(%arg0: i32) -> (i32, i32, i32) {
    %c0_i32 = arith.constant 0 : i32
    %c0_i32_0 = arith.constant 0 : i32
    %c0_i32_1 = arith.constant 0 : i32
    %c0_i32_2 = arith.constant 0 : i32
    return %c0_i32, %c0_i32_0, %c0_i32_1 : i32, i32, i32
  }
  func.func @transform_16(%arg0: i32) -> (i32, i32, i32) {
    %c0_i32 = arith.constant 0 : i32
    %c0_i32_0 = arith.constant 0 : i32
    %c0_i32_1 = arith.constant 0 : i32
    %c0_i32_2 = arith.constant 0 : i32
    return %c0_i32, %c0_i32_0, %c0_i32_1 : i32, i32, i32
  }
  func.func @transform_17(%arg0: i32) -> (i32, i32, i32) {
    %c0_i32 = arith.constant 0 : i32
    %c0_i32_0 = arith.constant 0 : i32
    %c0_i32_1 = arith.constant 0 : i32
    %c0_i32_2 = arith.constant 0 : i32
    return %c0_i32, %c0_i32_0, %c0_i32_1 : i32, i32, i32
  }
  func.func @transform_18(%arg0: i32) -> (i32, i32, i32) {
    %c0_i32 = arith.constant 0 : i32
    %c0_i32_0 = arith.constant 0 : i32
    %c0_i32_1 = arith.constant 0 : i32
    %c0_i32_2 = arith.constant 0 : i32
    return %c0_i32, %c0_i32_0, %c0_i32_1 : i32, i32, i32
  }
  func.func @transform_19(%arg0: i32) -> (i32, i32, i32) {
    %c0_i32 = arith.constant 0 : i32
    %c0_i32_0 = arith.constant 0 : i32
    %c0_i32_1 = arith.constant 0 : i32
    %c0_i32_2 = arith.constant 0 : i32
    return %c0_i32, %c0_i32_0, %c0_i32_1 : i32, i32, i32
  }
  func.func @transform_20(%arg0: i32) -> (i32, i32) {
    %c0_i32 = arith.constant 0 : i32
    %c0_i32_0 = arith.constant 0 : i32
    %c0_i32_1 = arith.constant 0 : i32
    return %c0_i32, %c0_i32_0 : i32, i32
  }
  func.func @transform_21(%arg0: i32) -> (i32, i32) {
    %c0_i32 = arith.constant 0 : i32
    %c0_i32_0 = arith.constant 0 : i32
    %c0_i32_1 = arith.constant 0 : i32
    return %c0_i32, %c0_i32_0 : i32, i32
  }
  func.func @transform_22(%arg0: i32) -> (i32, i32) {
    %c0_i32 = arith.constant 0 : i32
    %c0_i32_0 = arith.constant 0 : i32
    %c0_i32_1 = arith.constant 0 : i32
    return %c0_i32, %c0_i32_0 : i32, i32
  }
  func.func @transform_23(%arg0: i32) -> (i32, i32) {
    %c0_i32 = arith.constant 0 : i32
    %c0_i32_0 = arith.constant 0 : i32
    %c0_i32_1 = arith.constant 0 : i32
    return %c0_i32, %c0_i32_0 : i32, i32
  }
  func.func @transform_24(%arg0: i32) -> (i32, i32) {
    %c0_i32 = arith.constant 0 : i32
    %c0_i32_0 = arith.constant 0 : i32
    %c0_i32_1 = arith.constant 0 : i32
    return %c0_i32, %c0_i32_0 : i32, i32
  }
}

</mosaic_0001>

<bundles_post_ra>
// kernel: tpu_custom_call.1
= control target key start
LH: loop header
LB: loop body
LE: loop exit
PB: predicated region body
PF: predicated region fallthrough
CT: control target
= control target key end

     0   :  { %s4079_s0 = inlined_call_operand.hbm [shape: f32[16,32], index: 0, kind: input, shape index: {}]   ;;  %s4080_s1 = inlined_call_operand.vmem [shape: f32[32,64], index: 1, kind: input, shape index: {}]   ;;  %s4081_s2 = inlined_call_operand.vmem [shape: f32[64,32], index: 2, kind: input, shape index: {}]   ;;  %s4082_s3 = inlined_call_operand.hbm [shape: f32[16,64], index: 3, kind: input, shape index: {}]   ;;  %s4083_s4 = inlined_call_operand.vmem [shape: f32[2,1,32], index: 4, kind: input, shape index: {}]   ;;  %s4084_s5 = inlined_call_operand.vmem [shape: f32[2,1,32], index: 5, kind: input, shape index: {}]   ;;  %s4085_s6 = inlined_call_operand.vmem [shape: f32[2,32,32], index: 6, kind: input, shape index: {}]   ;;  %s4086_s7 = inlined_call_operand.hbm [shape: f32[2,1,32], index: 7, kind: input, shape index: {}]   ;;  %s4087_s8 = inlined_call_operand.vmem [shape: f32[2,32,32], index: 8, kind: input, shape index: {}]   ;;  %s4088_s9 = inlined_call_operand.hbm [shape: f32[2,1,32], index: 9, kind: input, shape index: {}]   ;;  %s4089_s10 = inlined_call_operand.vmem [shape: f32[2,32,32], index: 10, kind: input, shape index: {}]   ;;  %s4090_s11 = inlined_call_operand.hbm [shape: f32[2,1,32], index: 11, kind: input, shape index: {}]   ;;  %s4091_s12 = inlined_call_operand.vmem [shape: f32[2,32,32], index: 12, kind: input, shape index: {}]   ;;  %s4092_s13 = inlined_call_operand.vmem [shape: f32[2,1,32], index: 13, kind: input, shape index: {}]   ;;  %s4093_s14 = inlined_call_operand.vmem [shape: f32[2,1,32], index: 14, kind: input, shape index: {}]   ;;  %s4094_s15 = inlined_call_operand.vmem [shape: f32[2,1,32], index: 15, kind: input, shape index: {}]   ;;  %s4095_s16 = inlined_call_operand.vmem [shape: f32[2,32,128], index: 16, kind: input, shape index: {}]   ;;  %s4096_s17 = inlined_call_operand.vmem [shape: f32[2,1,128], index: 17, kind: input, shape index: {}]   ;;  %s4097_s18 = inlined_call_operand.vmem [shape: f32[2,128,32], index: 18, kind: input, shape index: {}]   ;;  %s4098_s19 = inlined_call_operand.vmem [shape: f32[2,1,32], index: 19, kind: input, shape index: {}]   ;;  %s4099_s20 = inlined_call_operand.vmem [shape: f32[1,32], index: 20, kind: input, shape index: {}]   ;;  %s4100_s21 = inlined_call_operand.vmem [shape: f32[1,32], index: 21, kind: input, shape index: {}]   ;;  %s4101_s22 = inlined_call_operand.vmem [shape: f32[32,128], index: 22, kind: input, shape index: {}]   ;;  %s4102_s23 = inlined_call_operand.vmem [shape: f32[1,128], index: 23, kind: input, shape index: {}]   ;;  %s4103_s24 = inlined_call_operand.hbm [shape: f32[16,128], index: 24, kind: output, shape index: {}]  }
   0x1   :  { %4118 = sst [smem:[#allocation16_spill]] %s4079_s0 }
   0x2   :  { %4119 = sst [smem:[#allocation17_spill]] %s4080_s1 }
   0x3   :  { %4120 = sst [smem:[#allocation18_spill]] %s4081_s2 }
   0x4   :  { %4121 = sst [smem:[#allocation19_spill]] %s4082_s3 }
   0x5   :  { %4122 = sst [smem:[#allocation20_spill]] %s4083_s4 }
   0x6   :  { %4123 = sst [smem:[#allocation21_spill]] %s4084_s5 }
   0x7   :  { %4124 = sst [smem:[#allocation22_spill]] %s4085_s6 }
   0x8   :  { %4125 = sst [smem:[#allocation23_spill]] %s4086_s7 }
   0x9   :  { %4126 = sst [smem:[#allocation24_spill]] %s4087_s8 }
   0xa   :  { %4127 = sst [smem:[#allocation25_spill]] %s4102_s23 }
   0xb   :  { %4128 = sst [smem:[#allocation26_spill]] %s4103_s24 }
   0xc   :  { %29 = vsyncpa [#allocation3], 0 }
   0xd   :  { %30 = vsyncpa [#allocation6], 0 }
   0xe   :  { %31 = vsyncpa [#allocation9], 0 }
   0xf   :  { %32 = vsyncpa [#allocation4], 0  ;;  %s3282_s5 = smov [#allocation5]   ;;  %s4129_s6 = sld [smem:[#allocation19_spill]] }
  0x10   :  { %s54_s26 = sshll.u32 %s3282_s5, 4  ;;  %s55_s26 = int_to_ptr.vmem [resolvable:$true] %s54_s26 }
  0x15   :  { %s3142_s2 = scalar_lea.hbm %s4129_s6, 256 }
  0x16   :  { %p3143_p0 = scmp.ne.s32.totalorder %s4129_s6, %s3142_s2  ;;  %p3146_p1 = scmp.lt.u32.totalorder %s3142_s2, %s4129_s6 }
  0x18   :  { %p3148_p2 = pnand %p3146_p1, %p3143_p0 }
  0x1a   :  { %3151 = shalt.err (!%p3148_p2)
}
  0x1b   :  { %s3152_s3 = scalar_lea.vmem %s55_s26, 256  ;;  %p3157_p4 = scmp.lt.s32.totalorder %s55_s26, %s55_s26 }
  0x1c   :  { %p3153_p3 = scmp.ne.s32.totalorder %s55_s26, %s3152_s3  ;;  %p3158_p5 = scmp.lt.s32.totalorder %s3152_s3, %s3152_s3 }
  0x1e   :  { %p3159_p6 = por %p3158_p5, %p3157_p4 }
  0x20   :  { %p3160_p7 = pnand %p3159_p6, %p3153_p3 }
  0x22   :  { %3163 = shalt.err (!%p3160_p7)
}
  0x23   :  { %s3283_s25 = smov 128   ;;  %s3284_s8 = smov 8  }
  0x24   :  { %60 = dma.hbm_to_vmem [thread:$0]  %s4129_s6, 256, %s55_s26, [#allocation6], %s3283_s25, %s3283_s25, %s3284_s8  }
  0x25   :  { %s3285_s5 = smov [#allocation8]   ;;  %s3286_s28 = smov [#allocation2]  }
  0x26   :  { %s86_s27 = sshll.u32 %s3285_s5, 4  ;;  %s38_s2 = sshll.u32 %s3286_s28, 4  ;;  %s87_s27 = int_to_ptr.vmem [resolvable:$true] %s86_s27  ;;  %s39_s2 = int_to_ptr.vmem [resolvable:$true] %s38_s2 }
  0x27   :  { %s3164_s7 = scalar_lea.hbm %s4088_s9, 32 }
  0x28   :  { %p3165_p8 = scmp.ne.s32.totalorder %s4088_s9, %s3164_s7  ;;  %p3168_p9 = scmp.lt.u32.totalorder %s3164_s7, %s4088_s9 }
  0x2a   :  { %p3170_p10 = pnand %p3168_p9, %p3165_p8 }
  0x2c   :  { %3173 = shalt.err (!%p3170_p10)
}
  0x2d   :  { %s3174_s26 = scalar_lea.vmem %s87_s27, 32  ;;  %p3179_p12 = scmp.lt.s32.totalorder %s87_s27, %s87_s27 }
  0x2e   :  { %p3175_p11 = scmp.ne.s32.totalorder %s87_s27, %s3174_s26  ;;  %p3180_p13 = scmp.lt.s32.totalorder %s3174_s26, %s3174_s26 }
  0x30   :  { %p3181_p0 = por %p3180_p13, %p3179_p12 }
  0x32   :  { %p3182_p1 = pnand %p3181_p0, %p3175_p11 }
  0x34   :  { %3185 = shalt.err (!%p3182_p1)
}
  0x35   :  { %s4114_s6 = smov 16   ;;  %s4116_s4 = smov 1  }
  0x36   :  { %92 = dma.hbm_to_vmem [thread:$0]  %s4088_s9, 32, %s87_s27, [#allocation9], %s4114_s6, %s4114_s6, %s4116_s4  }
  0x37   :  { %s4130_s28 = sld [smem:[#allocation16_spill]] }
  0x3d   :  { %s3186_s29 = scalar_lea.hbm %s4130_s28, 256 }
  0x3e   :  { %p3187_p2 = scmp.ne.s32.totalorder %s4130_s28, %s3186_s29  ;;  %p3190_p3 = scmp.lt.u32.totalorder %s3186_s29, %s4130_s28 }
  0x40   :  { %p3192_p4 = pnand %p3190_p3, %p3187_p2 }
  0x42   :  { %3195 = shalt.err (!%p3192_p4)
}
  0x43   :  { %s3196_s26 = scalar_lea.vmem %s39_s2, 256  ;;  %p3201_p6 = scmp.lt.s32.totalorder %s39_s2, %s39_s2 }
  0x44   :  { %p3197_p5 = scmp.ne.s32.totalorder %s39_s2, %s3196_s26  ;;  %p3202_p7 = scmp.lt.s32.totalorder %s3196_s26, %s3196_s26 }
  0x46   :  { %p3203_p8 = por %p3202_p7, %p3201_p6 }
  0x48   :  { %p3204_p9 = pnand %p3203_p8, %p3197_p5 }
  0x4a   :  { %3207 = shalt.err (!%p3204_p9)
}
  0x4b   :  { %44 = dma.hbm_to_vmem [thread:$0]  %s4130_s28, 256, %s39_s2, [#allocation3], %s3283_s25, %s3283_s25, %s3284_s8  }
  0x4c   :  { %s3289_s1 = smov [#allocation7]   ;;  %s3290_s23 = smov [#allocation10]  }
  0x4d   :  { %s72_s5 = sshll.u32 %s3289_s1, 4  ;;  %s100_s24 = sshll.u32 %s3290_s23, 4  ;;  %s73_s5 = int_to_ptr.vmem [resolvable:$true] %s72_s5  ;;  %s101_s24 = int_to_ptr.vmem [resolvable:$true] %s100_s24 }
  0x4e   :  { %s4131_s7 = sld [smem:[#allocation23_spill]] }
  0x54   :  { %s3208_s30 = scalar_lea.hbm %s4131_s7, 32 }
  0x55   :  { %p3209_p10 = scmp.ne.s32.totalorder %s4131_s7, %s3208_s30  ;;  %p3212_p11 = scmp.lt.u32.totalorder %s3208_s30, %s4131_s7 }
  0x57   :  { %p3214_p12 = pnand %p3212_p11, %p3209_p10 }
  0x59   :  { %3217 = shalt.err (!%p3214_p12)
}
  0x5a   :  { %s3218_s2 = scalar_lea.vmem %s73_s5, 32  ;;  %p3223_p0 = scmp.lt.s32.totalorder %s73_s5, %s73_s5 }
  0x5b   :  { %p3219_p13 = scmp.ne.s32.totalorder %s73_s5, %s3218_s2  ;;  %p3224_p1 = scmp.lt.s32.totalorder %s3218_s2, %s3218_s2 }
  0x5d   :  { %p3225_p2 = por %p3224_p1, %p3223_p0 }
  0x5f   :  { %p3226_p3 = pnand %p3225_p2, %p3219_p13 }
  0x61   :  { %3229 = shalt.err (!%p3226_p3)
}
  0x62   :  { %s4132_s28 = smov 1   ;;  %s4133_s9 = smov 16  }
  0x63   :  { %78 = dma.hbm_to_vmem [thread:$0]  %s4131_s7, 32, %s73_s5, [#allocation6], %s4133_s9, %s4133_s9, %s4132_s28  }
  0x64   :  { %s3230_s4 = scalar_lea.hbm %s4090_s11, 32 }
  0x65   :  { %p3231_p4 = scmp.ne.s32.totalorder %s4090_s11, %s3230_s4  ;;  %p3234_p5 = scmp.lt.u32.totalorder %s3230_s4, %s4090_s11 }
  0x67   :  { %p3236_p6 = pnand %p3234_p5, %p3231_p4 }
  0x69   :  { %3239 = shalt.err (!%p3236_p6)
}
  0x6a   :  { %s3240_s26 = scalar_lea.vmem %s101_s24, 32  ;;  %p3245_p8 = scmp.lt.s32.totalorder %s101_s24, %s101_s24 }
  0x6b   :  { %p3241_p7 = scmp.ne.s32.totalorder %s101_s24, %s3240_s26  ;;  %p3246_p9 = scmp.lt.s32.totalorder %s3240_s26, %s3240_s26 }
  0x6d   :  { %p3247_p10 = por %p3246_p9, %p3245_p8 }
  0x6f   :  { %p3248_p11 = pnand %p3247_p10, %p3241_p7 }
  0x71   :  { %3251 = shalt.err (!%p3248_p11)
}
  0x72   :  { %106 = dma.hbm_to_vmem [thread:$0]  %s4090_s11, 32, %s101_s24, [#allocation9], %s4133_s9, %s4133_s9, %s4132_s28  }
  0x73   :  { %3274 = dma.done.wait [#allocation3], 256  }
  0x74   :  { %3275 = vsyncadd [#allocation3], 4294967040 }
  0x75   :  { %3276 = dma.done.wait [#allocation6], 288  }
  0x76   :  { %3277 = vsyncadd [#allocation6], 4294967008 }
  0x77   :  { %3278 = dma.done.wait [#allocation9], 64  }
  0x78   :  { %3279 = vsyncadd [#allocation9], 4294967232  ;;  %vm164_vm0 = vcmask 261120   ;;  %v3494_v0 = vld [vmem:[#allocation2] sm:$0xff]  ;;  %v3496_v1 = vld [vmem:[#allocation2 + $0x8] sm:$0xff]  ;;  %s4134_s2 = sld [smem:[#allocation22_spill]] }
  0x79   :  { %v165_v2 = vsel %vm164_vm0, %v3494_v0, 0.0  ;;  %v168_v3 = vsel %vm164_vm0, %v3496_v1, 0.0  ;;  %v386_v16 = vld [vmem:[%s4089_s10] sm:$0xff]  ;;  %v387_v18 = vld [vmem:[%s4089_s10 + $0x8] sm:$0xff]  ;;  %v388_v23 = vld [vmem:[%s4089_s10 + $0x10] sm:$0xff]  ;;  %s4135_s27 = sld [smem:[#allocation24_spill]] }
  0x7a   :  { %166 = vadd.xlane.f32.xlu0 %v165_v2  ;;  %v2877_v21 = vpack.c.bf16 %v387_v18, %v386_v16  ;;  %v389_v24 = vld [vmem:[%s4089_s10 + $0x18] sm:$0xff]  ;;  %s4136_s29 = sld [smem:[#allocation20_spill]]  ;;  %s4137_s3 = sld [smem:[#allocation21_spill]]  ;;  %v2320_v48 = vld [vmem:[#allocation7] ss:$0 sm:$0xff]  ;;  %vm544_vm1 = vcmask 130048  }
  0x7b   :  { %v2881_v25 = vpack.c.bf16 %v389_v24, %v388_v23  ;;  %v2326_v49 = vld [vmem:[#allocation10] ss:$0 sm:$0xff]  ;;  %s4138_s1 = sld [smem:[#allocation18_spill]]  ;;  %v2323_v16 = vld [vmem:[#allocation8] ss:$0 sm:$0xff]  ;;  %s3292_s0 = smov 48  }
  0x7c   :  { %2878 = vmatprep.subr.bf16.mxu0 %v2877_v21  ;;  %vm553_vm2 = vcmask 392192   ;;  %s4139_s5 = sld [smem:[#allocation17_spill]]  ;;  %vm643_vm3 = vcmask 523264  }
  0x7d   :  { %2880 = vmatpush3.bf16.msra.mxu0 %v2877_v21  ;;  %s4140_s30 = sld [smem:[#allocation25_spill]] }
  0x7e   :  { %169 = vadd.xlane.f32.xlu0 %v168_v3  ;;  %v208_v14 = vld [vmem:[%s4134_s2] sm:$0xff]  ;;  %v209_v15 = vld [vmem:[%s4134_s2 + $0x8] sm:$0xff]  ;;  %v210_v19 = vld [vmem:[%s4134_s2 + $0x10] sm:$0xff]  ;;  %2882 = vmatprep.subr.bf16.mxu0 %v2881_v25 }
  0x7f   :  { %v2861_v17 = vpack.c.bf16 %v209_v15, %v208_v14  ;;  %v211_v20 = vld [vmem:[%s4134_s2 + $0x18] sm:$0xff]  ;;  %v300_v26 = vld [vmem:[%s4135_s27] sm:$0xff]  ;;  %v301_v27 = vld [vmem:[%s4135_s27 + $0x8] sm:$0xff] }
  0x80   :  { %v2865_v22 = vpack.c.bf16 %v211_v20, %v210_v19  ;;  %v2869_v28 = vpack.c.bf16 %v301_v27, %v300_v26  ;;  %v2318_v36 = vld [vmem:[%s4136_s29] ss:$0 sm:$0xff]  ;;  %v302_v43 = vld [vmem:[%s4135_s27 + $0x10] sm:$0xff]  ;;  %v303_v44 = vld [vmem:[%s4135_s27 + $0x18] sm:$0xff] }
  0x81   :  { %2862 = vmatprep.subr.bf16.mxu1 %v2861_v17  ;;  %2884 = vmatpush3.bf16.msra.mxu0 %v2881_v25  ;;  %v2319_v38 = vld [vmem:[%s4137_s3] ss:$0 sm:$0xff]  ;;  %v2873_v47 = vpack.c.bf16 %v303_v44, %v302_v43  ;;  %v3557_v50 = vld [vmem:[%s4138_s1 + $0x8] sm:$0xff]  ;;  %v3562_v51 = vld [vmem:[%s4138_s1 + $0x18] sm:$0xff] }
  0x82   :  { %2864 = vmatpush3.bf16.msra.mxu1 %v2861_v17  ;;  %v3567_v54 = vld [vmem:[%s4138_s1] sm:$0xff]  ;;  %v3572_v55 = vld [vmem:[%s4138_s1 + $0x28] sm:$0xff]  ;;  %v3577_v56 = vld [vmem:[%s4138_s1 + $0x38] sm:$0xff] }
  0x83   :  { %2866 = vmatprep.subr.bf16.mxu1 %v2865_v22  ;;  %v3584_v61 = vld [vmem:[%s4138_s1 + $0x10] sm:$0xff]  ;;  %v3589_v62 = vld [vmem:[%s4138_s1 + $0x20] sm:$0xff] }
  0x84   :  { %v3594_v63 = vld [vmem:[%s4138_s1 + $0x30] sm:$0xff]  ;;  %s3291_s1 = smov 32  }
  0x86   :  { %2868 = vmatpush3.bf16.msra.mxu1 %v2865_v22 }
  0x87   :  { %2870 = vmatprep.subr.bf16.mxu1 %v2869_v28 }
 0x107   :  { %v167_v4 = vpop.xlane.xlu0 %166 }
 0x108   :  { %v172_v5 = vmul.f32 0.03125, %v167_v4 }
 0x10a   :  { %v174_v6 = vsub.f32 %v3494_v0, %v172_v5 }
 0x10b   :  { %v170_v7 = vpop.xlane.xlu0 %169 }
 0x10c   :  { %v173_v8 = vmul.f32 0.03125, %v170_v7  ;;  %v176_v9 = vmul.f32 %v174_v6, %v174_v6 }
 0x10e   :  { %v175_v10 = vsub.f32 %v3496_v1, %v173_v8  ;;  %v178_v11 = vsel %vm164_vm0, %v176_v9, 0.0 }
 0x10f   :  { %179 = vadd.xlane.f32.xlu1 %v178_v11 }
 0x110   :  { %v177_v12 = vmul.f32 %v175_v10, %v175_v10 }
 0x112   :  { %v181_v13 = vsel %vm164_vm0, %v177_v12, 0.0 }
 0x113   :  { %182 = vadd.xlane.f32.xlu1 %v181_v13 }
 0x19c   :  { %v180_v29 = vpop.xlane.xlu1 %179 }
 0x19d   :  { %v184_v30 = vmul.f32 0.03125, %v180_v29 }
 0x19f   :  { %v186_v31 = vadd.f32 1e-05, %v184_v30 }
 0x1a0   :  { %v183_v32 = vpop.xlane.xlu1 %182 }
 0x1a1   :  { %3106 = vrsqrt.f32 %v186_v31  ;;  %v185_v33 = vmul.f32 0.03125, %v183_v32  ;;  %v3622_v32 = vld [vmem:[%s4139_s5] sm:$0xff] }
 0x1a3   :  { %v187_v34 = vadd.f32 1e-05, %v185_v33 }
 0x1a5   :  { %3108 = vrsqrt.f32 %v187_v34 }
 0x1ab   :  { %v3107_v35 = vpop.eup %3106 }
 0x1ac   :  { %v190_v37 = vmul.f32 %v3107_v35, %v174_v6  ;;  %v3629_v35 = vld [vmem:[%s4139_s5 + $0x8] sm:$0xff] }
 0x1ae   :  { %v198_v39 = vmul.f32 %v2318_v36, %v190_v37 }
 0x1af   :  { %v3109_v40 = vpop.eup %3108 }
 0x1b0   :  { %v191_v41 = vmul.f32 %v3109_v40, %v175_v10  ;;  %v206_v42 = vadd.f32 %v2319_v38, %v198_v39 }
 0x1b2   :  { %v199_v45 = vmul.f32 %v2318_v36, %v191_v41  ;;  %2580 = vmatprep.mubr.msk.f32.mxu1 %vm164_vm0, %v206_v42  ;;  %2602 = vmatprep.mubr.msk.f32.mxu0 %vm164_vm0, %v206_v42 }
 0x1b4   :  { %v207_v46 = vadd.f32 %v2319_v38, %v199_v45 }
 0x1b6   :  { %2581 = vmatmul.mubr.msk.f32.vlgmr.msra.gmra.mrb[0].mxu1 %vm164_vm0, %v207_v46  ;;  %2603 = vmatmul.mubr.msk.f32.vlgmr.msra.gmra.mrb[0].mxu0 %vm164_vm0, %v207_v46 }
 0x1b7   :  { %2872 = vmatpush3.bf16.msra.mxu1 %v2869_v28  ;;  %2591 = vmatprep.mubr.msk.f32.mxu1 %vm164_vm0, %v206_v42 }
 0x1b8   :  { %2874 = vmatprep.subr.bf16.mxu1 %v2873_v47 }
 0x1bb   :  { %2876 = vmatpush3.bf16.msra.mxu1 %v2873_v47 }
 0x1be   :  { %2592 = vmatmul.mubr.msk.f32.vlgmr.msra.gmra.mrb[2].mxu1 %vm164_vm0, %v207_v46 }
 0x289   :  { %v2582_v52 = vpop.f32.mrb[0].mxu1  ;;  %v2604_v53 = vpop.f32.mrb[0].mxu0 }
 0x28a   :  { %v3579_v57 = vadd.f32 %v2582_v52, %v2320_v48  ;;  %v469_v58 = vadd.f32 %v2604_v53, %v2326_v49  ;;  %v291_v59 = vpop.f32.mrb[1].mxu1  ;;  %v463_v60 = vpop.f32.mrb[1].mxu0  ;;  %v3641_v52 = vld [vmem:[%s4139_s5 + $0x10] sm:$0xff] }
 0x28b   :  { %v292_v2 = vadd.f32 %v2320_v48, %v291_v59  ;;  %v464_v3 = vadd.f32 %v2326_v49, %v463_v60 }
 0x28c   :  { %v657_v4 = vmul.f32 %v469_v58, %v3557_v50  ;;  %v659_v5 = vmul.f32 %v469_v58, %v3562_v51  ;;  %v661_v6 = vmul.f32 %v469_v58, %v3572_v55  ;;  %v663_v7 = vmul.f32 %v469_v58, %v3577_v56  ;;  %v3647_v58 = vld [vmem:[%s4139_s5 + $0x18] sm:$0xff] }
 0x28d   :  { %2613 = vmatprep.mubr.msk.f32.mxu1 %vm164_vm0, %v292_v2  ;;  %v656_v8 = vmul.f32 %v464_v3, %v3567_v54  ;;  %v658_v9 = vmul.f32 %v464_v3, %v3584_v61  ;;  %v660_v10 = vmul.f32 %v464_v3, %v3589_v62  ;;  %v662_v11 = vmul.f32 %v464_v3, %v3594_v63 }
 0x28f   :  { %v2893_v12 = vpack.c.bf16 %v657_v4, %v656_v8  ;;  %v2897_v13 = vpack.c.bf16 %v659_v5, %v658_v9  ;;  %v2901_v14 = vpack.c.bf16 %v661_v6, %v660_v10  ;;  %v2905_v15 = vpack.c.bf16 %v663_v7, %v662_v11  ;;  %v3655_v6 = vld [vmem:[#allocation5] sm:$0xff]  ;;  %v3657_v8 = vld [vmem:[#allocation5 + $0x8] sm:$0xff] }
 0x291   :  { %v2593_v17 = vpop.f32.mrb[2].mxu1  ;;  %2894 = vmatprep.subr.bf16.mxu0 %v2893_v12 }
 0x292   :  { %v377_v18 = vpop.f32.mrb[3].mxu1  ;;  %2896 = vmatpush3.bf16.msra.mxu0 %v2893_v12  ;;  %v383_v20 = vadd.f32 %v2593_v17, %v2323_v16 }
 0x293   :  { %v378_v19 = vadd.f32 %v2323_v16, %v377_v18  ;;  %2898 = vmatprep.subr.bf16.mxu0 %v2897_v13  ;;  %v3683_v16 = vpack.c.bf16 %v3577_v56, %v3594_v63 }
 0x295   :  { %472 = vxpose.xlu0.b32.start [1/2] (short) (narrow) %v378_v19, 32 }
 0x296   :  { %2900 = vmatpush3.bf16.msra.mxu0 %v2897_v13 }
 0x297   :  { %2902 = vmatprep.subr.bf16.mxu0 %v2901_v14 }
 0x299   :  { %473 = vxpose.xlu0.b32.end [2/2] (short) (narrow) %v383_v20, 32 }
 0x29a   :  { %2904 = vmatpush3.bf16.msra.mxu0 %v2901_v14  ;;  %v3671_v14 = vpack.c.bf16 %v3562_v51, %v3584_v61 }
 0x29b   :  { %2906 = vmatprep.subr.bf16.mxu0 %v2905_v15 }
 0x29e   :  { %2908 = vmatpush3.bf16.msra.mxu0 %v2905_v15  ;;  %v3677_v15 = vpack.c.bf16 %v3572_v55, %v3589_v62 }
 0x315   :  { %v488_v21 = vpop.trf.xlu0 }
 0x316   :  { %508 = vrot.lane.b32.xlu1 %v488_v21, %s4133_s9 }
 0x319   :  { %v489_v22 = vpop.trf.xlu0 }
 0x31a   :  { %520 = vrot.lane.b32.xlu1 %v488_v21, %s3291_s1 }
 0x31d   :  { %v490_v23 = vpop.trf.xlu0 }
 0x31e   :  { %532 = vrot.lane.b32.xlu1 %v488_v21, %s3292_s0 }
 0x321   :  { %v491_v24 = vpop.trf.xlu0 }
 0x322   :  { %510 = vrot.lane.b32.xlu1 %v489_v22, %s4133_s9  ;;  %526 = vrot.lane.b32.xlu0 %v491_v24, %s3291_s1 }
 0x326   :  { %522 = vrot.lane.b32.xlu1 %v489_v22, %s3291_s1 }
 0x32a   :  { %534 = vrot.lane.b32.xlu1 %v489_v22, %s3292_s0 }
 0x32e   :  { %512 = vrot.lane.b32.xlu1 %v490_v23, %s4133_s9 }
 0x332   :  { %524 = vrot.lane.b32.xlu1 %v490_v23, %s3291_s1 }
 0x336   :  { %514 = vrot.lane.b32.xlu1 %v491_v24, %s4133_s9 }
 0x33a   :  { %536 = vrot.lane.b32.xlu1 %v490_v23, %s3292_s0 }
 0x33e   :  { %538 = vrot.lane.b32.xlu1 %v491_v24, %s3292_s0 }
 0x388   :  { %v509_v25 = vpop.permute.xlu1 %508 }
 0x389   :  { %v545_v30 = vsel %vm544_vm1, %v488_v21, %v509_v25  ;;  %v824_v25 = vld [vmem:[%s4091_s12] sm:$0xff] }
 0x38c   :  { %v521_v26 = vpop.permute.xlu1 %520 }
 0x38d   :  { %v549_v31 = vsel %vm164_vm0, %v545_v30, %v521_v26  ;;  %v825_v26 = vld [vmem:[%s4091_s12 + $0x8] sm:$0xff] }
 0x390   :  { %v533_v27 = vpop.permute.xlu1 %532 }
 0x391   :  { %v554_v33 = vsel %vm553_vm2, %v549_v31, %v533_v27  ;;  %v2925_v27 = vpack.c.bf16 %v825_v26, %v824_v25  ;;  %v1061_v25 = vld [vmem:[%s4097_s18 + $0x28] sm:$0xff] }
 0x392   :  { %v558_v39 = vmul.f32 %v554_v33, %v3622_v32 }
 0x393   :  { %2926 = vmatprep.subr.bf16.mxu0 %v2925_v27 }
 0x394   :  { %v511_v28 = vpop.permute.xlu1 %510  ;;  %v527_v47 = vpop.permute.xlu0 %526 }
 0x395   :  { %v546_v34 = vsel %vm544_vm1, %v489_v22, %v511_v28  ;;  %v826_v28 = vld [vmem:[%s4091_s12 + $0x10] sm:$0xff] }
 0x398   :  { %v523_v29 = vpop.permute.xlu1 %522 }
 0x399   :  { %v550_v36 = vsel %vm164_vm0, %v546_v34, %v523_v29  ;;  %v827_v29 = vld [vmem:[%s4091_s12 + $0x18] sm:$0xff] }
 0x39a   :  { %v2929_v30 = vpack.c.bf16 %v827_v29, %v826_v28  ;;  %v1063_v28 = vld [vmem:[%s4097_s18 + $0x38] sm:$0xff] }
 0x39c   :  { %v535_v37 = vpop.permute.xlu1 %534 }
 0x39d   :  { %v555_v38 = vsel %vm553_vm2, %v550_v36, %v535_v37 }
 0x39e   :  { %v559_v40 = vmul.f32 %v555_v38, %v3629_v35 }
 0x3a0   :  { %v513_v41 = vpop.permute.xlu1 %512  ;;  %v2885_v42 = vpack.c.bf16 %v559_v40, %v558_v39 }
 0x3a1   :  { %v547_v46 = vsel %vm544_vm1, %v490_v23, %v513_v41  ;;  %v2335_v41 = vld [vmem:[%s4092_s13] ss:$0 sm:$0xff] }
 0x3a2   :  { %2886 = vmatprep.subr.bf16.mxu1 %v2885_v42 }
 0x3a3   :  { %2888 = vmatpush3.bf16.msra.mxu1 %v2885_v42 }
 0x3a4   :  { %v525_v43 = vpop.permute.xlu1 %524 }
 0x3a5   :  { %v551_v49 = vsel %vm164_vm0, %v547_v46, %v525_v43 }
 0x3a8   :  { %v515_v44 = vpop.permute.xlu1 %514 }
 0x3a9   :  { %v548_v48 = vsel %vm544_vm1, %v491_v24, %v515_v44 }
 0x3aa   :  { %v552_v59 = vsel %vm164_vm0, %v548_v48, %v527_v47 }
 0x3ac   :  { %v537_v45 = vpop.permute.xlu1 %536 }
 0x3ad   :  { %v556_v53 = vsel %vm553_vm2, %v551_v49, %v537_v45 }
 0x3ae   :  { %v560_v3 = vmul.f32 %v556_v53, %v3641_v52 }
 0x3b0   :  { %v539_v60 = vpop.permute.xlu1 %538 }
 0x3b1   :  { %v557_v2 = vsel %vm553_vm2, %v552_v59, %v539_v60 }
 0x3b2   :  { %v561_v4 = vmul.f32 %v557_v2, %v3647_v58 }
 0x3b4   :  { %v2889_v5 = vpack.c.bf16 %v561_v4, %v560_v3 }
 0x3b6   :  { %2890 = vmatprep.subr.bf16.mxu1 %v2889_v5 }
 0x3b7   :  { %2892 = vmatpush3.bf16.msra.mxu1 %v2889_v5 }
 0x3ba   :  { %2614 = vmatmul.mubr.msk.f32.vlgmr.msra.gmra.mrb[4].mxu1 %vm164_vm0, %v3579_v57  ;;  %v3665_v57 = vpack.c.bf16 %v3557_v50, %v3567_v54 }
 0x3bc   :  { %2910 = vmatprep.subr.bf16.mxu1 %v3665_v57 }
 0x3bd   :  { %2912 = vmatpush3.bf16.msra.mxu1 %v3665_v57 }
 0x3be   :  { %2914 = vmatprep.subr.bf16.mxu1 %v3671_v14 }
 0x3c1   :  { %2916 = vmatpush3.bf16.msra.mxu1 %v3671_v14 }
 0x3c2   :  { %2918 = vmatprep.subr.bf16.mxu1 %v3677_v15 }
 0x3c5   :  { %2920 = vmatpush3.bf16.msra.mxu1 %v3677_v15 }
 0x3c6   :  { %2922 = vmatprep.subr.bf16.mxu1 %v3683_v16 }
 0x3c9   :  { %2924 = vmatpush3.bf16.msra.mxu1 %v3683_v16 }
 0x48d   :  { %v2615_v7 = vpop.f32.mrb[4].mxu1 }
 0x48e   :  { %v634_v9 = vpop.f32.mrb[5].mxu1  ;;  %v640_v11 = vadd.f32 %v2615_v7, %v3657_v8 }
 0x48f   :  { %v635_v10 = vadd.f32 %v634_v9, %v3655_v6  ;;  %v962_v9 = vld [vmem:[%s4095_s16] sm:$0xff] }
 0x490   :  { %v647_v13 = vsel %vm643_vm3, %v640_v11, -inf }
 0x491   :  { %v644_v12 = vsel %vm643_vm3, %v635_v10, -inf }
 0x492   :  { %645 = vmax.xlane.f32.xlu1 %v644_v12  ;;  %v964_v12 = vld [vmem:[%s4095_s16 + $0x10] sm:$0xff] }
 0x496   :  { %648 = vmax.xlane.f32.xlu1 %v647_v13  ;;  %v965_v13 = vld [vmem:[%s4095_s16 + $0x18] sm:$0xff] }
 0x51f   :  { %v646_v17 = vpop.xlane.xlu1 %645 }
 0x520   :  { %v650_v18 = vsub.f32 %v635_v10, %v646_v17  ;;  %v963_v10 = vld [vmem:[%s4095_s16 + $0x8] sm:$0xff]  ;;  %v2937_v17 = vpack.c.bf16 %v965_v13, %v964_v12 }
 0x522   :  { %v652_v19 = vmul.f32 1.442695, %v650_v18  ;;  %v1056_v18 = vld [vmem:[%s4097_s18] sm:$0xff] }
 0x523   :  { %v649_v20 = vpop.xlane.xlu1 %648 }
 0x524   :  { %3110 = vpow2.f32 %v652_v19  ;;  %v651_v21 = vsub.f32 %v640_v11, %v649_v20  ;;  %v2933_v11 = vpack.c.bf16 %v963_v10, %v962_v9  ;;  %v1057_v19 = vld [vmem:[%s4097_s18 + $0x8] sm:$0xff]  ;;  %v1058_v20 = vld [vmem:[%s4097_s18 + $0x10] sm:$0xff] }
 0x525   :  { %v1070_v10 = vld [vmem:[%s4097_s18 + $0x70] sm:$0xff] }
 0x526   :  { %v654_v22 = vmul.f32 1.442695, %v651_v21  ;;  %2934 = vmatprep.subr.bf16.mxu1 %v2933_v11  ;;  %v2941_v21 = vpack.c.bf16 %v1057_v19, %v1056_v18 }
 0x528   :  { %3112 = vpow2.f32 %v654_v22  ;;  %v1059_v22 = vld [vmem:[%s4097_s18 + $0x18] sm:$0xff] }
 0x52e   :  { %v3111_v23 = vpop.eup %3110 }
 0x52f   :  { %2632 = vmatprep.mubr.msk.f32.mxu0 %vm643_vm3, %v3111_v23  ;;  %2651 = vmatprep.mubr.msk.f32.mxu1 %vm643_vm3, %v3111_v23  ;;  %v2945_v23 = vpack.c.bf16 %v1059_v22, %v1058_v20 }
 0x532   :  { %v3113_v24 = vpop.eup %3112 }
 0x533   :  { %2633 = vmatmul.mubr.msk.f32.vlgmr.msra.gmra.mrb[2].mxu0 %vm643_vm3, %v3113_v24  ;;  %2652 = vmatmul.mubr.msk.f32.vlgmr.msra.gmra.mrb[6].mxu1 %vm643_vm3, %v3113_v24  ;;  %v1060_v24 = vld [vmem:[%s4097_s18 + $0x20] sm:$0xff] }
 0x534   :  { %2928 = vmatpush3.bf16.msra.mxu0 %v2925_v27  ;;  %2936 = vmatpush3.bf16.msra.mxu1 %v2933_v11  ;;  %v2949_v26 = vpack.c.bf16 %v1061_v25, %v1060_v24  ;;  %v1062_v27 = vld [vmem:[%s4097_s18 + $0x30] sm:$0xff] }
 0x535   :  { %2930 = vmatprep.subr.bf16.mxu0 %v2929_v30  ;;  %2938 = vmatprep.subr.bf16.mxu1 %v2937_v17  ;;  %v2953_v29 = vpack.c.bf16 %v1063_v28, %v1062_v27 }
 0x538   :  { %2932 = vmatpush3.bf16.msra.mxu0 %v2929_v30  ;;  %2940 = vmatpush3.bf16.msra.mxu1 %v2937_v17  ;;  %v1064_v30 = vld [vmem:[%s4097_s18 + $0x40] sm:$0xff] }
 0x539   :  { %2942 = vmatprep.subr.bf16.mxu0 %v2941_v21 }
 0x606   :  { %v2634_v31 = vpop.f32.mrb[2].mxu0  ;;  %v2653_v33 = vpop.f32.mrb[6].mxu1 }
 0x607   :  { %3114 = vrcp.f32 %v2653_v33  ;;  %v736_v34 = vpop.f32.mrb[3].mxu0  ;;  %v811_v36 = vpop.f32.mrb[7].mxu1 }
 0x608   :  { %3116 = vrcp.f32 %v811_v36  ;;  %v1067_v36 = vld [vmem:[%s4097_s18 + $0x58] sm:$0xff] }
 0x611   :  { %v3115_v37 = vpop.eup %3114 }
 0x612   :  { %v3117_v38 = vpop.eup %3116  ;;  %v823_v39 = vmul.f32 %v3115_v37, %v2634_v31  ;;  %v1065_v31 = vld [vmem:[%s4097_s18 + $0x48] sm:$0xff] }
 0x613   :  { %v821_v40 = vmul.f32 %v3117_v38, %v736_v34  ;;  %v2957_v33 = vpack.c.bf16 %v1065_v31, %v1064_v30  ;;  %v1066_v34 = vld [vmem:[%s4097_s18 + $0x50] sm:$0xff]  ;;  %v1068_v38 = vld [vmem:[%s4097_s18 + $0x60] sm:$0xff] }
 0x614   :  { %v2961_v37 = vpack.c.bf16 %v1067_v36, %v1066_v34 }
 0x615   :  { %2662 = vmatprep.mubr.msk.f32.mxu0 %vm164_vm0, %v821_v40 }
 0x616   :  { %2663 = vmatmul.mubr.msk.f32.vlgmr.msra.gmra.mrb[4].mxu0 %vm164_vm0, %v823_v39  ;;  %v1069_v39 = vld [vmem:[%s4097_s18 + $0x68] sm:$0xff] }
 0x617   :  { %2944 = vmatpush3.bf16.msra.mxu0 %v2941_v21  ;;  %v2965_v40 = vpack.c.bf16 %v1069_v39, %v1068_v38  ;;  %v2343_v21 = vld [vmem:[%s4098_s19] ss:$0 sm:$0xff] }
 0x618   :  { %2946 = vmatprep.subr.bf16.mxu0 %v2945_v23 }
 0x61b   :  { %2948 = vmatpush3.bf16.msra.mxu0 %v2945_v23 }
 0x61c   :  { %2950 = vmatprep.subr.bf16.mxu0 %v2949_v26 }
 0x61f   :  { %2952 = vmatpush3.bf16.msra.mxu0 %v2949_v26 }
 0x620   :  { %2954 = vmatprep.subr.bf16.mxu0 %v2953_v29 }
 0x623   :  { %2956 = vmatpush3.bf16.msra.mxu0 %v2953_v29 }
 0x624   :  { %2958 = vmatprep.subr.bf16.mxu0 %v2957_v33 }
 0x627   :  { %2960 = vmatpush3.bf16.msra.mxu0 %v2957_v33 }
 0x628   :  { %2962 = vmatprep.subr.bf16.mxu0 %v2961_v37 }
 0x62b   :  { %2964 = vmatpush3.bf16.msra.mxu0 %v2961_v37 }
 0x62c   :  { %2966 = vmatprep.subr.bf16.mxu0 %v2965_v40 }
 0x62f   :  { %2968 = vmatpush3.bf16.msra.mxu0 %v2965_v40  ;;  %v2348_v40 = vld [vmem:[%s4134_s2 + $0x20] sm:$0xff] }
 0x6e9   :  { %v2664_v42 = vpop.f32.mrb[4].mxu0 }
 0x6ea   :  { %v913_v43 = vadd.f32 %v2664_v42, %v2335_v41  ;;  %v907_v44 = vpop.f32.mrb[5].mxu0 }
 0x6eb   :  { %v908_v45 = vadd.f32 %v2335_v41, %v907_v44 }
 0x6ec   :  { %v3709_v46 = vadd.f32 %v913_v43, %v3496_v1 }
 0x6ed   :  { %v3712_v47 = vadd.f32 %v908_v45, %v3494_v0 }
 0x6ee   :  { %v923_v48 = vsel %vm164_vm0, %v3709_v46, 0.0 }
 0x6ef   :  { %924 = vadd.xlane.f32.xlu0 %v923_v48  ;;  %v920_v49 = vsel %vm164_vm0, %v3712_v47, 0.0 }
 0x6f0   :  { %921 = vadd.xlane.f32.xlu1 %v920_v49 }
 0x77c   :  { %v925_v53 = vpop.xlane.xlu0 %924 }
 0x77d   :  { %v927_v59 = vmul.f32 0.03125, %v925_v53  ;;  %v922_v60 = vpop.xlane.xlu1 %921  ;;  %v2338_v53 = vld [vmem:[%s4093_s14] ss:$0 sm:$0xff] }
 0x77e   :  { %v926_v2 = vmul.f32 0.03125, %v922_v60  ;;  %v2339_v60 = vld [vmem:[%s4094_s15] ss:$0 sm:$0xff] }
 0x77f   :  { %v3719_v3 = vsub.f32 %v3709_v46, %v927_v59 }
 0x780   :  { %v928_v1 = vsub.f32 %v3712_v47, %v926_v2 }
 0x781   :  { %v931_v5 = vmul.f32 %v3719_v3, %v3719_v3 }
 0x782   :  { %v930_v4 = vmul.f32 %v928_v1, %v928_v1 }
 0x783   :  { %v935_v7 = vsel %vm164_vm0, %v931_v5, 0.0 }
 0x784   :  { %v932_v0 = vsel %vm164_vm0, %v930_v4, 0.0 }
 0x785   :  { %933 = vadd.xlane.f32.xlu1 %v932_v0 }
 0x789   :  { %936 = vadd.xlane.f32.xlu1 %v935_v7 }
 0x812   :  { %v934_v41 = vpop.xlane.xlu1 %933 }
 0x813   :  { %v938_v42 = vmul.f32 0.03125, %v934_v41  ;;  %v2349_v41 = vld [vmem:[%s4134_s2 + $0x28] sm:$0xff] }
 0x815   :  { %v940_v43 = vadd.f32 1e-05, %v938_v42  ;;  %v2973_v42 = vpack.c.bf16 %v2349_v41, %v2348_v40  ;;  %v2366_v40 = vld [vmem:[#allocation10 + $0x1] ss:$0 sm:$0xff] }
 0x816   :  { %v937_v44 = vpop.xlane.xlu1 %936 }
 0x817   :  { %3118 = vrsqrt.f32 %v940_v43  ;;  %v939_v45 = vmul.f32 0.03125, %v937_v44  ;;  %2974 = vmatprep.subr.bf16.mxu1 %v2973_v42  ;;  %v2350_v43 = vld [vmem:[%s4134_s2 + $0x30] sm:$0xff]  ;;  %v2351_v44 = vld [vmem:[%s4134_s2 + $0x38] sm:$0xff] }
 0x819   :  { %v941_v48 = vadd.f32 1e-05, %v939_v45  ;;  %v2977_v45 = vpack.c.bf16 %v2351_v44, %v2350_v43 }
 0x81b   :  { %3120 = vrsqrt.f32 %v941_v48  ;;  %v2355_v48 = vld [vmem:[%s4135_s27 + $0x20] sm:$0xff] }
 0x821   :  { %v3119_v49 = vpop.eup %3118 }
 0x822   :  { %v944_v59 = vmul.f32 %v3119_v49, %v928_v1  ;;  %v1071_v1 = vld [vmem:[%s4097_s18 + $0x78] sm:$0xff]  ;;  %v2356_v49 = vld [vmem:[%s4135_s27 + $0x28] sm:$0xff] }
 0x823   :  { %v2969_v11 = vpack.c.bf16 %v1071_v1, %v1070_v10  ;;  %v2347_v1 = vld [vmem:[%s4137_s3 + $0x1] ss:$0 sm:$0xff] }
 0x824   :  { %v952_v2 = vmul.f32 %v2338_v53, %v944_v59 }
 0x825   :  { %v3121_v4 = vpop.eup %3120  ;;  %2970 = vmatprep.subr.bf16.mxu0 %v2969_v11 }
 0x826   :  { %v945_v0 = vmul.f32 %v3121_v4, %v3719_v3  ;;  %v960_v5 = vadd.f32 %v2339_v60, %v952_v2  ;;  %2972 = vmatpush3.bf16.msra.mxu0 %v2969_v11  ;;  %v2340_v3 = vld [vmem:[%s4096_s17] ss:$0 sm:$0xff] }
 0x828   :  { %v953_v7 = vmul.f32 %v2338_v53, %v945_v0  ;;  %2673 = vmatprep.mubr.msk.f32.mxu1 %vm164_vm0, %v960_v5  ;;  %v2981_v53 = vpack.c.bf16 %v2356_v49, %v2355_v48 }
 0x82a   :  { %v961_v9 = vadd.f32 %v2339_v60, %v953_v7 }
 0x82c   :  { %2674 = vmatmul.mubr.msk.f32.vlgmr.msra.gmra.mrb[8].mxu1 %vm164_vm0, %v961_v9  ;;  %v2346_v9 = vld [vmem:[%s4136_s29 + $0x1] ss:$0 sm:$0xff] }
 0x82d   :  { %2976 = vmatpush3.bf16.msra.mxu1 %v2973_v42 }
 0x82e   :  { %2978 = vmatprep.subr.bf16.mxu1 %v2977_v45 }
 0x831   :  { %2980 = vmatpush3.bf16.msra.mxu1 %v2977_v45 }
 0x832   :  { %2982 = vmatprep.subr.bf16.mxu1 %v2981_v53 }
 0x8ff   :  { %v2675_v12 = vpop.f32.mrb[8].mxu1 }
 0x900   :  { %v1051_v13 = vadd.f32 %v2675_v12, %v2340_v3  ;;  %v1045_v17 = vpop.f32.mrb[9].mxu1 }
 0x901   :  { %v1046_v18 = vadd.f32 %v2340_v3, %v1045_v17  ;;  %v2357_v17 = vld [vmem:[%s4135_s27 + $0x30] sm:$0xff] }
 0x902   :  { %v1055_v20 = vmax.f32 %v1051_v13, 0.0 }
 0x903   :  { %v1054_v19 = vmax.f32 %v1046_v18, 0.0  ;;  %v2358_v18 = vld [vmem:[%s4135_s27 + $0x38] sm:$0xff] }
 0x905   :  { %2708 = vmatprep.mubr.f32.mxu0 %v1054_v19 }
 0x906   :  { %2709 = vmatmul.mubr.f32.vlgmr.msra.gmra.mrb[6].mxu0 %v1055_v20 }
 0x9d9   :  { %v2710_v22 = vpop.f32.mrb[6].mxu0 }
 0x9da   :  { %v1145_v23 = vpop.f32.mrb[7].mxu0  ;;  %v1151_v24 = vadd.f32 %v2710_v22, %v2343_v21  ;;  %v2362_v22 = vld [vmem:[%s4089_s10 + $0x20] sm:$0xff] }
 0x9db   :  { %v1146_v25 = vadd.f32 %v2343_v21, %v1145_v23  ;;  %v2985_v21 = vpack.c.bf16 %v2358_v18, %v2357_v17  ;;  %v2363_v23 = vld [vmem:[%s4089_s10 + $0x28] sm:$0xff] }
 0x9dc   :  { %v3805_v27 = vadd.f32 %v1151_v24, %v3709_v46  ;;  %v2989_v24 = vpack.c.bf16 %v2363_v23, %v2362_v22 }
 0x9dd   :  { %v3802_v26 = vadd.f32 %v1146_v25, %v3712_v47  ;;  %v2364_v25 = vld [vmem:[%s4089_s10 + $0x30] sm:$0xff] }
 0x9de   :  { %v1163_v29 = vsel %vm164_vm0, %v3805_v27, 0.0 }
 0x9df   :  { %v1160_v28 = vsel %vm164_vm0, %v3802_v26, 0.0 }
 0x9e0   :  { %1161 = vadd.xlane.f32.xlu1 %v1160_v28  ;;  %v2365_v28 = vld [vmem:[%s4089_s10 + $0x38] sm:$0xff] }
 0x9e4   :  { %1164 = vadd.xlane.f32.xlu1 %v1163_v29  ;;  %v2993_v29 = vpack.c.bf16 %v2365_v28, %v2364_v25 }
 0xa6d   :  { %v1162_v30 = vpop.xlane.xlu1 %1161 }
 0xa6e   :  { %v1166_v31 = vmul.f32 0.03125, %v1162_v30  ;;  %v2352_v30 = vld [vmem:[#allocation7 + $0x1] ss:$0 sm:$0xff] }
 0xa70   :  { %v1168_v33 = vsub.f32 %v3802_v26, %v1166_v31 }
 0xa71   :  { %v1165_v34 = vpop.xlane.xlu1 %1164 }
 0xa72   :  { %v1167_v36 = vmul.f32 0.03125, %v1165_v34  ;;  %v1170_v37 = vmul.f32 %v1168_v33, %v1168_v33 }
 0xa74   :  { %v1169_v47 = vsub.f32 %v3805_v27, %v1167_v36  ;;  %v1172_v46 = vsel %vm164_vm0, %v1170_v37, 0.0  ;;  %v2359_v37 = vld [vmem:[#allocation8 + $0x1] ss:$0 sm:$0xff] }
 0xa75   :  { %1173 = vadd.xlane.f32.xlu1 %v1172_v46 }
 0xa76   :  { %v1171_v38 = vmul.f32 %v1169_v47, %v1169_v47 }
 0xa78   :  { %v1175_v39 = vsel %vm164_vm0, %v1171_v38, 0.0 }
 0xa79   :  { %1176 = vadd.xlane.f32.xlu1 %v1175_v39 }
 0xb02   :  { %v1174_v59 = vpop.xlane.xlu1 %1173 }
 0xb03   :  { %v1178_v60 = vmul.f32 0.03125, %v1174_v59 }
 0xb05   :  { %v1180_v2 = vadd.f32 1e-05, %v1178_v60 }
 0xb06   :  { %v1177_v4 = vpop.xlane.xlu1 %1176 }
 0xb07   :  { %3122 = vrsqrt.f32 %v1180_v2  ;;  %v1179_v0 = vmul.f32 0.03125, %v1177_v4 }
 0xb09   :  { %v1181_v5 = vadd.f32 1e-05, %v1179_v0 }
 0xb0b   :  { %3124 = vrsqrt.f32 %v1181_v5 }
 0xb11   :  { %v3123_v7 = vpop.eup %3122 }
 0xb12   :  { %v1184_v10 = vmul.f32 %v3123_v7, %v1168_v33 }
 0xb14   :  { %v1192_v11 = vmul.f32 %v2346_v9, %v1184_v10 }
 0xb15   :  { %v3125_v3 = vpop.eup %3124 }
 0xb16   :  { %v1185_v12 = vmul.f32 %v3125_v3, %v1169_v47  ;;  %v1200_v13 = vadd.f32 %v2347_v1, %v1192_v11 }
 0xb18   :  { %v1193_v19 = vmul.f32 %v2346_v9, %v1185_v12  ;;  %2719 = vmatprep.mubr.msk.f32.mxu1 %vm164_vm0, %v1200_v13 }
 0xb1a   :  { %v1201_v20 = vadd.f32 %v2347_v1, %v1193_v19 }
 0xb1c   :  { %2720 = vmatmul.mubr.msk.f32.vlgmr.msra.gmra.mrb[10].mxu1 %vm164_vm0, %v1201_v20 }
 0xb1d   :  { %2984 = vmatpush3.bf16.msra.mxu1 %v2981_v53  ;;  %2730 = vmatprep.mubr.msk.f32.mxu1 %vm164_vm0, %v1200_v13 }
 0xb1e   :  { %2986 = vmatprep.subr.bf16.mxu1 %v2985_v21 }
 0xb21   :  { %2988 = vmatpush3.bf16.msra.mxu1 %v2985_v21 }
 0xb22   :  { %2990 = vmatprep.subr.bf16.mxu1 %v2989_v24 }
 0xb24   :  { %2731 = vmatmul.mubr.msk.f32.vlgmr.msra.gmra.mrb[12].mxu1 %vm164_vm0, %v1201_v20 }
 0xb25   :  { %2992 = vmatpush3.bf16.msra.mxu1 %v2989_v24  ;;  %2741 = vmatprep.mubr.msk.f32.mxu1 %vm164_vm0, %v1200_v13 }
 0xb26   :  { %2994 = vmatprep.subr.bf16.mxu1 %v2993_v29 }
 0xb29   :  { %2996 = vmatpush3.bf16.msra.mxu1 %v2993_v29 }
 0xb2c   :  { %2742 = vmatmul.mubr.msk.f32.vlgmr.msra.gmra.mrb[14].mxu1 %vm164_vm0, %v1201_v20 }
 0xbef   :  { %v2721_v31 = vpop.f32.mrb[10].mxu1 }
 0xbf0   :  { %v3863_v33 = vadd.f32 %v2721_v31, %v2352_v30  ;;  %v1287_v34 = vpop.f32.mrb[11].mxu1 }
 0xbf1   :  { %v1288_v36 = vadd.f32 %v2352_v30, %v1287_v34 }
 0xbf3   :  { %2752 = vmatprep.mubr.msk.f32.mxu1 %vm164_vm0, %v1288_v36 }
 0xbf7   :  { %v2732_v47 = vpop.f32.mrb[12].mxu1 }
 0xbf8   :  { %v1375_v46 = vpop.f32.mrb[13].mxu1  ;;  %v1381_v39 = vadd.f32 %v2732_v47, %v2359_v37 }
 0xbf9   :  { %v1376_v38 = vadd.f32 %v2359_v37, %v1375_v46 }
 0xbfb   :  { %1472 = vxpose.xlu1.b32.start [1/2] (short) (narrow) %v1376_v38, 32 }
 0xbff   :  { %v2743_v41 = vpop.f32.mrb[14].mxu1  ;;  %1473 = vxpose.xlu1.b32.end [2/2] (short) (narrow) %v1381_v39, 32 }
 0xc00   :  { %v1469_v42 = vadd.f32 %v2743_v41, %v2366_v40  ;;  %v1463_v43 = vpop.f32.mrb[15].mxu1 }
 0xc01   :  { %v1464_v44 = vadd.f32 %v2366_v40, %v1463_v43 }
 0xc02   :  { %v1654_v45 = vmul.f32 %v1469_v42, %v3557_v50  ;;  %v1656_v48 = vmul.f32 %v1469_v42, %v3562_v51  ;;  %v1658_v49 = vmul.f32 %v1469_v42, %v3572_v55  ;;  %v1660_v53 = vmul.f32 %v1469_v42, %v3577_v56 }
 0xc03   :  { %v1653_v59 = vmul.f32 %v1464_v44, %v3567_v54  ;;  %v1655_v60 = vmul.f32 %v1464_v44, %v3584_v61  ;;  %v1657_v2 = vmul.f32 %v1464_v44, %v3589_v62  ;;  %v1659_v4 = vmul.f32 %v1464_v44, %v3594_v63 }
 0xc05   :  { %v3005_v0 = vpack.c.bf16 %v1654_v45, %v1653_v59  ;;  %v3009_v5 = vpack.c.bf16 %v1656_v48, %v1655_v60  ;;  %v3013_v7 = vpack.c.bf16 %v1658_v49, %v1657_v2  ;;  %v3017_v9 = vpack.c.bf16 %v1660_v53, %v1659_v4  ;;  %v2377_v48 = vld [vmem:[%s4091_s12 + $0x30] sm:$0xff]  ;;  %v2378_v49 = vld [vmem:[%s4091_s12 + $0x38] sm:$0xff] }
 0xc06   :  { %v3041_v53 = vpack.c.bf16 %v2378_v49, %v2377_v48  ;;  %v2385_v48 = vld [vmem:[%s4093_s14 + $0x1] ss:$0 sm:$0xff] }
 0xc07   :  { %3006 = vmatprep.subr.bf16.mxu0 %v3005_v0 }
 0xc08   :  { %3008 = vmatpush3.bf16.msra.mxu0 %v3005_v0 }
 0xc09   :  { %3010 = vmatprep.subr.bf16.mxu0 %v3009_v5 }
 0xc0c   :  { %3012 = vmatpush3.bf16.msra.mxu0 %v3009_v5 }
 0xc0d   :  { %3014 = vmatprep.subr.bf16.mxu0 %v3013_v7 }
 0xc10   :  { %3016 = vmatpush3.bf16.msra.mxu0 %v3013_v7 }
 0xc11   :  { %3018 = vmatprep.subr.bf16.mxu0 %v3017_v9 }
 0xc14   :  { %3020 = vmatpush3.bf16.msra.mxu0 %v3017_v9 }
 0xc7b   :  { %v1488_v50 = vpop.trf.xlu1 }
 0xc7c   :  { %1508 = vrot.lane.b32.xlu0 %v1488_v50, %s4133_s9 }
 0xc7f   :  { %v1489_v51 = vpop.trf.xlu1 }
 0xc80   :  { %1520 = vrot.lane.b32.xlu0 %v1488_v50, %s3291_s1 }
 0xc83   :  { %v1490_v54 = vpop.trf.xlu1 }
 0xc84   :  { %1532 = vrot.lane.b32.xlu0 %v1488_v50, %s3292_s0 }
 0xc87   :  { %v1491_v55 = vpop.trf.xlu1 }
 0xc88   :  { %1510 = vrot.lane.b32.xlu0 %v1489_v51, %s4133_s9  ;;  %1526 = vrot.lane.b32.xlu1 %v1491_v55, %s3291_s1 }
 0xc8c   :  { %1522 = vrot.lane.b32.xlu0 %v1489_v51, %s3291_s1 }
 0xc90   :  { %1534 = vrot.lane.b32.xlu0 %v1489_v51, %s3292_s0 }
 0xc94   :  { %1512 = vrot.lane.b32.xlu0 %v1490_v54, %s4133_s9 }
 0xc98   :  { %1524 = vrot.lane.b32.xlu0 %v1490_v54, %s3291_s1 }
 0xc9c   :  { %1514 = vrot.lane.b32.xlu0 %v1491_v55, %s4133_s9 }
 0xca0   :  { %1536 = vrot.lane.b32.xlu0 %v1490_v54, %s3292_s0 }
 0xca4   :  { %1538 = vrot.lane.b32.xlu0 %v1491_v55, %s3292_s0 }
 0xcee   :  { %v1509_v56 = vpop.permute.xlu0 %1508 }
 0xcef   :  { %v1544_v1 = vsel %vm544_vm1, %v1488_v50, %v1509_v56  ;;  %v2380_v50 = vld [vmem:[%s4092_s13 + $0x1] ss:$0 sm:$0xff] }
 0xcf2   :  { %v1521_v61 = vpop.permute.xlu0 %1520 }
 0xcf3   :  { %v1548_v11 = vsel %vm164_vm0, %v1544_v1, %v1521_v61 }
 0xcf6   :  { %v1533_v62 = vpop.permute.xlu0 %1532 }
 0xcf7   :  { %v1552_v3 = vsel %vm553_vm2, %v1548_v11, %v1533_v62 }
 0xcf8   :  { %v1556_v19 = vmul.f32 %v1552_v3, %v3622_v32 }
 0xcfa   :  { %v1511_v63 = vpop.permute.xlu0 %1510  ;;  %v1527_v29 = vpop.permute.xlu1 %1526 }
 0xcfb   :  { %v1545_v12 = vsel %vm544_vm1, %v1489_v51, %v1511_v63 }
 0xcfe   :  { %v1523_v10 = vpop.permute.xlu0 %1522 }
 0xcff   :  { %v1549_v13 = vsel %vm164_vm0, %v1545_v12, %v1523_v10 }
 0xd02   :  { %v1535_v17 = vpop.permute.xlu0 %1534 }
 0xd03   :  { %v1553_v18 = vsel %vm553_vm2, %v1549_v13, %v1535_v17 }
 0xd04   :  { %v1557_v20 = vmul.f32 %v1553_v18, %v3629_v35 }
 0xd06   :  { %v1513_v21 = vpop.permute.xlu0 %1512  ;;  %v2997_v22 = vpack.c.bf16 %v1557_v20, %v1556_v19  ;;  %v2387_v20 = vld [vmem:[%s4095_s16 + $0x20] sm:$0xff] }
 0xd07   :  { %v1546_v28 = vsel %vm544_vm1, %v1490_v54, %v1513_v21  ;;  %v2388_v21 = vld [vmem:[%s4095_s16 + $0x28] sm:$0xff] }
 0xd08   :  { %2998 = vmatprep.subr.bf16.mxu1 %v2997_v22 }
 0xd09   :  { %3000 = vmatpush3.bf16.msra.mxu1 %v2997_v22  ;;  %v3045_v22 = vpack.c.bf16 %v2388_v21, %v2387_v20 }
 0xd0a   :  { %v1525_v23 = vpop.permute.xlu0 %1524 }
 0xd0b   :  { %v1550_v31 = vsel %vm164_vm0, %v1546_v28, %v1525_v23  ;;  %v2389_v23 = vld [vmem:[%s4095_s16 + $0x30] sm:$0xff]  ;;  %v2395_v28 = vld [vmem:[%s4097_s18 + $0x80] sm:$0xff] }
 0xd0e   :  { %v1515_v24 = vpop.permute.xlu0 %1514 }
 0xd0f   :  { %v1547_v30 = vsel %vm544_vm1, %v1491_v55, %v1515_v24  ;;  %v2390_v24 = vld [vmem:[%s4095_s16 + $0x38] sm:$0xff] }
 0xd10   :  { %v1551_v32 = vsel %vm164_vm0, %v1547_v30, %v1527_v29  ;;  %v2396_v29 = vld [vmem:[%s4097_s18 + $0x88] sm:$0xff]  ;;  %v2397_v30 = vld [vmem:[%s4097_s18 + $0x90] sm:$0xff] }
 0xd12   :  { %v1537_v25 = vpop.permute.xlu0 %1536 }
 0xd13   :  { %v1554_v34 = vsel %vm553_vm2, %v1550_v31, %v1537_v25  ;;  %v3049_v25 = vpack.c.bf16 %v2390_v24, %v2389_v23  ;;  %v3053_v31 = vpack.c.bf16 %v2396_v29, %v2395_v28 }
 0xd14   :  { %v1558_v37 = vmul.f32 %v1554_v34, %v3641_v52  ;;  %v2398_v34 = vld [vmem:[%s4097_s18 + $0x98] sm:$0xff] }
 0xd16   :  { %v1539_v36 = vpop.permute.xlu0 %1538 }
 0xd17   :  { %v1555_v35 = vsel %vm553_vm2, %v1551_v32, %v1539_v36  ;;  %v3057_v32 = vpack.c.bf16 %v2398_v34, %v2397_v30  ;;  %v2399_v36 = vld [vmem:[%s4097_s18 + $0xa0] sm:$0xff] }
 0xd18   :  { %v1559_v47 = vmul.f32 %v1555_v35, %v3647_v58  ;;  %v2400_v35 = vld [vmem:[%s4097_s18 + $0xa8] sm:$0xff] }
 0xd1a   :  { %v3001_v46 = vpack.c.bf16 %v1559_v47, %v1558_v37  ;;  %v3061_v37 = vpack.c.bf16 %v2400_v35, %v2399_v36  ;;  %v2401_v47 = vld [vmem:[%s4097_s18 + $0xb0] sm:$0xff]  ;;  %v2208_v36 = vld [vmem:[%s4101_s22 + $0x18] sm:$0xff] }
 0xd1c   :  { %3002 = vmatprep.subr.bf16.mxu1 %v3001_v46 }
 0xd1d   :  { %3004 = vmatpush3.bf16.msra.mxu1 %v3001_v46  ;;  %v2402_v46 = vld [vmem:[%s4097_s18 + $0xb8] sm:$0xff] }
 0xd1e   :  { %3022 = vmatprep.subr.bf16.mxu1 %v3665_v57 }
 0xd20   :  { %2753 = vmatmul.mubr.msk.f32.vlgmr.msra.gmra.mrb[16].mxu1 %vm164_vm0, %v3863_v33 }
 0xd21   :  { %3024 = vmatpush3.bf16.msra.mxu1 %v3665_v57 }
 0xd22   :  { %3026 = vmatprep.subr.bf16.mxu1 %v3671_v14 }
 0xd25   :  { %3028 = vmatpush3.bf16.msra.mxu1 %v3671_v14 }
 0xd26   :  { %3030 = vmatprep.subr.bf16.mxu1 %v3677_v15 }
 0xd29   :  { %3032 = vmatpush3.bf16.msra.mxu1 %v3677_v15 }
 0xd2a   :  { %3034 = vmatprep.subr.bf16.mxu1 %v3683_v16 }
 0xd2d   :  { %3036 = vmatpush3.bf16.msra.mxu1 %v3683_v16 }
 0xd2e   :  { %3046 = vmatprep.subr.bf16.mxu1 %v3045_v22 }
 0xdf3   :  { %v2754_v52 = vpop.f32.mrb[16].mxu1 }
 0xdf4   :  { %v1638_v58 = vadd.f32 %v2754_v52, %v3657_v8  ;;  %v1632_v38 = vpop.f32.mrb[17].mxu1  ;;  %v2376_v8 = vld [vmem:[%s4091_s12 + $0x28] sm:$0xff]  ;;  %v3065_v52 = vpack.c.bf16 %v2402_v46, %v2401_v47 }
 0xdf5   :  { %v1633_v33 = vadd.f32 %v1632_v38, %v3655_v6  ;;  %v2375_v6 = vld [vmem:[%s4091_s12 + $0x20] sm:$0xff]  ;;  %v2404_v38 = vld [vmem:[%s4097_s18 + $0xc8] sm:$0xff] }
 0xdf6   :  { %v1644_v57 = vsel %vm643_vm3, %v1638_v58, -inf  ;;  %v3037_v45 = vpack.c.bf16 %v2376_v8, %v2375_v6 }
 0xdf7   :  { %1645 = vmax.xlane.f32.xlu1 %v1644_v57  ;;  %v1641_v39 = vsel %vm643_vm3, %v1633_v33, -inf  ;;  %v2405_v57 = vld [vmem:[%s4097_s18 + $0xd0] sm:$0xff] }
 0xdf8   :  { %1642 = vmax.xlane.f32.xlu0 %v1641_v39  ;;  %3038 = vmatprep.subr.bf16.mxu0 %v3037_v45  ;;  %v2406_v39 = vld [vmem:[%s4097_s18 + $0xd8] sm:$0xff] }
 0xe84   :  { %v1646_v14 = vpop.xlane.xlu1 %1645 }
 0xe85   :  { %v1648_v40 = vsub.f32 %v1638_v58, %v1646_v14  ;;  %v1643_v41 = vpop.xlane.xlu0 %1642  ;;  %v2403_v58 = vld [vmem:[%s4097_s18 + $0xc0] sm:$0xff]  ;;  %v3073_v14 = vpack.c.bf16 %v2406_v39, %v2405_v57 }
 0xe86   :  { %v1647_v15 = vsub.f32 %v1633_v33, %v1643_v41  ;;  %v3069_v33 = vpack.c.bf16 %v2404_v38, %v2403_v58  ;;  %v2408_v41 = vld [vmem:[%s4097_s18 + $0xe8] sm:$0xff]  ;;  %v2413_v57 = vld [vmem:[%s4099_s20] ss:$0 sm:$0xff]  ;;  %s3293_s20 = smov [#allocation11]  }
 0xe87   :  { %v1651_v42 = vmul.f32 1.442695, %v1648_v40  ;;  %v2407_v40 = vld [vmem:[%s4097_s18 + $0xe0] sm:$0xff]  ;;  %s2304_s26 = sshll.u32 %s3293_s20, 4  ;;  %s2305_s26 = int_to_ptr.vmem [resolvable:$true] %s2304_s26 }
 0xe88   :  { %v1649_v43 = vmul.f32 1.442695, %v1647_v15  ;;  %v3077_v15 = vpack.c.bf16 %v2408_v41, %v2407_v40  ;;  %p3257_p13 = scmp.lt.s32.totalorder %s2305_s26, %s2305_s26 }
 0xe8a   :  { %3126 = vpow2.f32 %v1649_v43 }
 0xe8b   :  { %3128 = vpow2.f32 %v1651_v42 }
 0xe94   :  { %v3127_v16 = vpop.eup %3126 }
 0xe95   :  { %v3129_v44 = vpop.eup %3128  ;;  %2771 = vmatprep.mubr.msk.f32.mxu0 %vm643_vm3, %v3127_v16  ;;  %2790 = vmatprep.mubr.msk.f32.mxu1 %vm643_vm3, %v3127_v16 }
 0xe96   :  { %2772 = vmatmul.mubr.msk.f32.vlgmr.msra.gmra.mrb[8].mxu0 %vm643_vm3, %v3129_v44  ;;  %2791 = vmatmul.mubr.msk.f32.vlgmr.msra.gmra.mrb[18].mxu1 %vm643_vm3, %v3129_v44 }
 0xe97   :  { %3040 = vmatpush3.bf16.msra.mxu0 %v3037_v45  ;;  %3048 = vmatpush3.bf16.msra.mxu1 %v3045_v22 }
 0xe98   :  { %3042 = vmatprep.subr.bf16.mxu0 %v3041_v53  ;;  %3050 = vmatprep.subr.bf16.mxu1 %v3049_v25 }
 0xe9b   :  { %3044 = vmatpush3.bf16.msra.mxu0 %v3041_v53  ;;  %3052 = vmatpush3.bf16.msra.mxu1 %v3049_v25  ;;  %v2386_v53 = vld [vmem:[%s4094_s15 + $0x1] ss:$0 sm:$0xff] }
 0xe9c   :  { %3054 = vmatprep.subr.bf16.mxu0 %v3053_v31 }
 0xf69   :  { %v2773_v59 = vpop.f32.mrb[8].mxu0  ;;  %v2792_v60 = vpop.f32.mrb[18].mxu1 }
 0xf6a   :  { %3130 = vrcp.f32 %v2792_v60  ;;  %v1733_v2 = vpop.f32.mrb[9].mxu0  ;;  %v1808_v4 = vpop.f32.mrb[19].mxu1 }
 0xf6b   :  { %3132 = vrcp.f32 %v1808_v4 }
 0xf74   :  { %v3131_v0 = vpop.eup %3130 }
 0xf75   :  { %v3133_v5 = vpop.eup %3132  ;;  %v1820_v7 = vmul.f32 %v3131_v0, %v2773_v59 }
 0xf76   :  { %v1818_v9 = vmul.f32 %v3133_v5, %v1733_v2 }
 0xf78   :  { %2801 = vmatprep.mubr.msk.f32.mxu0 %vm164_vm0, %v1818_v9  ;;  %v2410_v9 = vld [vmem:[%s4097_s18 + $0xf8] sm:$0xff] }
 0xf79   :  { %2802 = vmatmul.mubr.msk.f32.vlgmr.msra.gmra.mrb[10].mxu0 %vm164_vm0, %v1820_v7  ;;  %v2409_v7 = vld [vmem:[%s4097_s18 + $0xf0] sm:$0xff] }
 0xf7a   :  { %3056 = vmatpush3.bf16.msra.mxu0 %v3053_v31  ;;  %v2206_v31 = vld [vmem:[%s4101_s22 + $0x8] sm:$0xff] }
 0xf7b   :  { %3058 = vmatprep.subr.bf16.mxu0 %v3057_v32 }
 0xf7e   :  { %3060 = vmatpush3.bf16.msra.mxu0 %v3057_v32  ;;  %v2207_v32 = vld [vmem:[%s4101_s22 + $0x10] sm:$0xff] }
 0xf7f   :  { %3062 = vmatprep.subr.bf16.mxu0 %v3061_v37  ;;  %v3089_v35 = vpack.c.bf16 %v2208_v36, %v2207_v32 }
 0xf82   :  { %3064 = vmatpush3.bf16.msra.mxu0 %v3061_v37 }
 0xf83   :  { %3066 = vmatprep.subr.bf16.mxu0 %v3065_v52 }
 0xf86   :  { %3068 = vmatpush3.bf16.msra.mxu0 %v3065_v52 }
 0xf87   :  { %3070 = vmatprep.subr.bf16.mxu0 %v3069_v33 }
 0xf8a   :  { %3072 = vmatpush3.bf16.msra.mxu0 %v3069_v33 }
 0xf8b   :  { %3074 = vmatprep.subr.bf16.mxu0 %v3073_v14 }
 0xf8e   :  { %3076 = vmatpush3.bf16.msra.mxu0 %v3073_v14  ;;  %v2414_v14 = vld [vmem:[%s4100_s21] ss:$0 sm:$0xff]  ;;  %s3252_s21 = scalar_lea.vmem %s2305_s26, 256 }
 0xf8f   :  { %3078 = vmatprep.subr.bf16.mxu0 %v3077_v15  ;;  %p3253_p12 = scmp.ne.s32.totalorder %s2305_s26, %s3252_s21  ;;  %p3258_p0 = scmp.lt.s32.totalorder %s3252_s21, %s3252_s21 }
 0xf91   :  { %p3259_p1 = por %p3258_p0, %p3257_p13 }
 0xf92   :  { %3080 = vmatpush3.bf16.msra.mxu0 %v3077_v15 }
 0xf93   :  { %p3260_p2 = pnand %p3259_p1, %p3253_p12 }
0x104c   :  { %v2803_v51 = vpop.f32.mrb[10].mxu0 }
0x104d   :  { %v1906_v54 = vpop.f32.mrb[11].mxu0  ;;  %v1912_v55 = vadd.f32 %v2803_v51, %v2380_v50  ;;  %v2392_v51 = vld [vmem:[%s4096_s17 + $0x1] ss:$0 sm:$0xff] }
0x104e   :  { %v1907_v56 = vadd.f32 %v2380_v50, %v1906_v54  ;;  %v3081_v50 = vpack.c.bf16 %v2410_v9, %v2409_v7 }
0x104f   :  { %v3941_v62 = vadd.f32 %v1912_v55, %v3805_v27 }
0x1050   :  { %v3938_v61 = vadd.f32 %v1907_v56, %v3802_v26  ;;  %3082 = vmatprep.subr.bf16.mxu0 %v3081_v50 }
0x1051   :  { %v1924_v10 = vsel %vm164_vm0, %v3941_v62, 0.0  ;;  %3084 = vmatpush3.bf16.msra.mxu0 %v3081_v50 }
0x1052   :  { %v1921_v63 = vsel %vm164_vm0, %v3938_v61, 0.0 }
0x1053   :  { %1922 = vadd.xlane.f32.xlu0 %v1921_v63 }
0x1057   :  { %1925 = vadd.xlane.f32.xlu0 %v1924_v10 }
0x10e0   :  { %v1923_v1 = vpop.xlane.xlu0 %1922 }
0x10e1   :  { %v1927_v11 = vmul.f32 0.03125, %v1923_v1 }
0x10e3   :  { %v3948_v3 = vsub.f32 %v3938_v61, %v1927_v11  ;;  %v2412_v11 = vld [vmem:[%s4098_s19 + $0x1] ss:$0 sm:$0xff] }
0x10e4   :  { %v1926_v12 = vpop.xlane.xlu0 %1925 }
0x10e5   :  { %v1928_v13 = vmul.f32 0.03125, %v1926_v12  ;;  %v1931_v26 = vmul.f32 %v3948_v3, %v3948_v3 }
0x10e7   :  { %v3953_v27 = vsub.f32 %v3941_v62, %v1928_v13  ;;  %v1933_v17 = vsel %vm164_vm0, %v1931_v26, 0.0 }
0x10e8   :  { %1934 = vadd.xlane.f32.xlu0 %v1933_v17 }
0x10e9   :  { %v1932_v18 = vmul.f32 %v3953_v27, %v3953_v27 }
0x10eb   :  { %v1936_v19 = vsel %vm164_vm0, %v1932_v18, 0.0 }
0x10ec   :  { %1937 = vadd.xlane.f32.xlu0 %v1936_v19 }
0x1175   :  { %v1935_v42 = vpop.xlane.xlu0 %1934 }
0x1176   :  { %v1939_v43 = vmul.f32 0.03125, %v1935_v42 }
0x1178   :  { %v1941_v16 = vadd.f32 1e-05, %v1939_v43 }
0x1179   :  { %v1938_v44 = vpop.xlane.xlu0 %1937 }
0x117a   :  { %3134 = vrsqrt.f32 %v1941_v16  ;;  %v1940_v6 = vmul.f32 0.03125, %v1938_v44  ;;  %v2415_v44 = vld [vmem:[%s4140_s30] ss:$0 sm:$0xff] }
0x117c   :  { %v1942_v8 = vadd.f32 1e-05, %v1940_v6 }
0x117e   :  { %3136 = vrsqrt.f32 %v1942_v8 }
0x1184   :  { %v3135_v45 = vpop.eup %3134 }
0x1185   :  { %v1945_v49 = vmul.f32 %v3135_v45, %v3948_v3 }
0x1187   :  { %v1953_v59 = vmul.f32 %v2385_v48, %v1945_v49 }
0x1188   :  { %v3137_v60 = vpop.eup %3136 }
0x1189   :  { %v1946_v2 = vmul.f32 %v3137_v60, %v3953_v27  ;;  %v1961_v4 = vadd.f32 %v2386_v53, %v1953_v59 }
0x118b   :  { %v1954_v0 = vmul.f32 %v2385_v48, %v1946_v2  ;;  %2812 = vmatprep.mubr.msk.f32.mxu1 %vm164_vm0, %v1961_v4 }
0x118d   :  { %v1962_v5 = vadd.f32 %v2386_v53, %v1954_v0 }
0x118f   :  { %2813 = vmatmul.mubr.msk.f32.vlgmr.msra.gmra.mrb[20].mxu1 %vm164_vm0, %v1962_v5 }
0x1262   :  { %v2814_v54 = vpop.f32.mrb[20].mxu1 }
0x1263   :  { %v2054_v55 = vadd.f32 %v2814_v54, %v2392_v51  ;;  %v2048_v56 = vpop.f32.mrb[21].mxu1 }
0x1264   :  { %v2049_v63 = vadd.f32 %v2392_v51, %v2048_v56 }
0x1265   :  { %v2058_v1 = vmax.f32 %v2054_v55, 0.0 }
0x1266   :  { %v2057_v10 = vmax.f32 %v2049_v63, 0.0 }
0x1268   :  { %2847 = vmatprep.mubr.f32.mxu0 %v2057_v10 }
0x1269   :  { %2848 = vmatmul.mubr.f32.vlgmr.msra.gmra.mrb[12].mxu0 %v2058_v1 }
0x133c   :  { %v2849_v3 = vpop.f32.mrb[12].mxu0 }
0x133d   :  { %v2150_v12 = vpop.f32.mrb[13].mxu0  ;;  %v2156_v13 = vadd.f32 %v2849_v3, %v2412_v11 }
0x133e   :  { %v2151_v26 = vadd.f32 %v2412_v11, %v2150_v12 }
0x133f   :  { %v2160_v18 = vadd.f32 %v2156_v13, %v3941_v62  ;;  %v2205_v62 = vld [vmem:[%s4101_s22] sm:$0xff] }
0x1340   :  { %v2159_v27 = vadd.f32 %v2151_v26, %v3938_v61  ;;  %v3085_v34 = vpack.c.bf16 %v2206_v31, %v2205_v62 }
0x1341   :  { %v2166_v19 = vsel %vm164_vm0, %v2160_v18, 0.0 }
0x1342   :  { %v2163_v17 = vsel %vm164_vm0, %v2159_v27, 0.0  ;;  %3086 = vmatprep.subr.bf16.mxu1 %v3085_v34 }
0x1343   :  { %2164 = vadd.xlane.f32.xlu0 %v2163_v17  ;;  %3088 = vmatpush3.bf16.msra.mxu1 %v3085_v34 }
0x1344   :  { %3090 = vmatprep.subr.bf16.mxu1 %v3089_v35 }
0x1347   :  { %2167 = vadd.xlane.f32.xlu0 %v2166_v19  ;;  %3092 = vmatpush3.bf16.msra.mxu1 %v3089_v35 }
0x13d0   :  { %v2165_v20 = vpop.xlane.xlu0 %2164 }
0x13d1   :  { %v2169_v21 = vmul.f32 0.03125, %v2165_v20 }
0x13d3   :  { %v2171_v22 = vsub.f32 %v2159_v27, %v2169_v21 }
0x13d4   :  { %v2168_v23 = vpop.xlane.xlu0 %2167 }
0x13d5   :  { %v2170_v24 = vmul.f32 0.03125, %v2168_v23  ;;  %v2173_v25 = vmul.f32 %v2171_v22, %v2171_v22 }
0x13d7   :  { %v2172_v28 = vsub.f32 %v2160_v18, %v2170_v24  ;;  %v2175_v29 = vsel %vm164_vm0, %v2173_v25, 0.0 }
0x13d8   :  { %2176 = vadd.xlane.f32.xlu0 %v2175_v29 }
0x13d9   :  { %v2174_v30 = vmul.f32 %v2172_v28, %v2172_v28 }
0x13db   :  { %v2178_v61 = vsel %vm164_vm0, %v2174_v30, 0.0 }
0x13dc   :  { %2179 = vadd.xlane.f32.xlu0 %v2178_v61 }
0x1465   :  { %v2177_v37 = vpop.xlane.xlu0 %2176 }
0x1466   :  { %v2181_v47 = vmul.f32 0.03125, %v2177_v37 }
0x1468   :  { %v2183_v46 = vadd.f32 1e-05, %v2181_v47 }
0x1469   :  { %v2180_v52 = vpop.xlane.xlu0 %2179 }
0x146a   :  { %3138 = vrsqrt.f32 %v2183_v46  ;;  %v2182_v58 = vmul.f32 0.03125, %v2180_v52 }
0x146c   :  { %v2184_v38 = vadd.f32 1e-05, %v2182_v58 }
0x146e   :  { %3140 = vrsqrt.f32 %v2184_v38 }
0x1474   :  { %v3139_v33 = vpop.eup %3138 }
0x1475   :  { %v2187_v39 = vmul.f32 %v3139_v33, %v2171_v22 }
0x1477   :  { %v2195_v40 = vmul.f32 %v2413_v57, %v2187_v39 }
0x1478   :  { %v3141_v41 = vpop.eup %3140 }
0x1479   :  { %v2188_v15 = vmul.f32 %v3141_v41, %v2172_v28  ;;  %v2203_v42 = vadd.f32 %v2414_v14, %v2195_v40 }
0x147b   :  { %v2196_v43 = vmul.f32 %v2413_v57, %v2188_v15  ;;  %2858 = vmatprep.mubr.msk.f32.mxu1 %vm164_vm0, %v2203_v42 }
0x147d   :  { %v2204_v16 = vadd.f32 %v2414_v14, %v2196_v43 }
0x147f   :  { %2859 = vmatmul.mubr.msk.f32.vlgmr.msra.gmra.mrb[22].mxu1 %vm164_vm0, %v2204_v16 }
0x1552   :  { %v2860_v6 = vpop.f32.mrb[22].mxu1 }
0x1553   :  { %v2294_v8 = vadd.f32 %v2860_v6, %v2415_v44  ;;  %v2288_v45 = vpop.f32.mrb[23].mxu1 }
0x1554   :  { %v2289_v48 = vadd.f32 %v2415_v44, %v2288_v45 }
0x1555   :  { %2298 = vst [vmem:[#allocation11 + $0x8] sm:$0xff] %v2294_v8 }
0x1556   :  { %2297 = vst [vmem:[#allocation11] sm:$0xff] %v2289_v48 }
0x1557   :  { %3263 = shalt.err (!%p3260_p2)
}
0x1558   :  { %s4141_s7 = sld [smem:[#allocation26_spill]] }
0x155e   :  { %s3264_s11 = scalar_lea.hbm %s4141_s7, 256 }
0x155f   :  { %p3265_p3 = scmp.ne.s32.totalorder %s4141_s7, %s3264_s11  ;;  %p3268_p4 = scmp.lt.u32.totalorder %s3264_s11, %s4141_s7 }
0x1561   :  { %p3270_p5 = pnand %p3268_p4, %p3265_p3 }
0x1563   :  { %3273 = shalt.err (!%p3270_p5)
}
0x1564   :  { %2310 = dma.vmem_to_hbm [thread:$0]  %s2305_s26, 256, %s4141_s7, [#allocation4], %s3283_s25, %s3283_s25, %s3284_s8  }
0x1565   :  { %3280 = dma.done.wait [#allocation4], 256  }
0x1566   :  { %3281 = vsyncadd [#allocation4], 4294967040 }
0x1567   :  { %2314 = vsyncpa [#allocation3], 1 }
0x1568   :  { %2315 = vsyncpa [#allocation6], 1 }
0x1569   :  { %2316 = vsyncpa [#allocation9], 1 }
0x156a   :  { %2317 = vsyncpa [#allocation4], 1 }

</bundles_post_ra>
